<compile_context>
chip_gen: v6e
topology: v6e:2x2x1
jax: 0.10.0
libtpu: 0.0.40
codegen_flags: <defaults>
</compile_context>

<pallas_src>
import functools

import jax
import jax.numpy as jnp
from jax.experimental import pallas as pl
from jax.experimental.pallas import tpu as pltpu


# ----------------------------------------------------------------------------
# Kernel body
# ----------------------------------------------------------------------------
def _cvp_kernel(x_ref,
                w1a_ref, b1a_ref, w2a_ref, b2a_ref,
                w1b_ref, b1b_ref, w2b_ref, b2b_ref,
                t_ref, r_ref):
    """Fused double-MLP for one (TM, D) row tile.

    x and the weights are bf16; all matmuls accumulate in f32 on the MXU;
    bias-add / ReLU run in f32 on the VPU.
    """
    x = x_ref[...]                                                   # (TM, D) bf16

    # ---- transform_module: Linear -> ReLU -> Linear -> ReLU ----
    h1 = jnp.dot(x, w1a_ref[...], preferred_element_type=jnp.float32) + b1a_ref[...]
    h1 = jnp.maximum(h1, 0.0)
    t = jnp.dot(h1.astype(w2a_ref.dtype), w2a_ref[...],
                preferred_element_type=jnp.float32) + b2a_ref[...]
    t = jnp.maximum(t, 0.0)
    t_ref[...] = t.astype(t_ref.dtype)

    # ---- retransform_module applied to the transform features ----
    # (the .view() reshape in PyTorch does not permute data, so flat t is identical)
    h2 = jnp.dot(t.astype(w1b_ref.dtype), w1b_ref[...],
                 preferred_element_type=jnp.float32) + b1b_ref[...]
    h2 = jnp.maximum(h2, 0.0)
    r = jnp.dot(h2.astype(w2b_ref.dtype), w2b_ref[...],
                preferred_element_type=jnp.float32) + b2b_ref[...]
    r = jnp.maximum(r, 0.0)
    r_ref[...] = r.astype(r_ref.dtype)


# ----------------------------------------------------------------------------
# Hardware-derived sizing helpers
# ----------------------------------------------------------------------------
def _round_up(x, m):
    return (x + m - 1) // m * m


def _tpu_info():
    try:
        return pltpu.get_tpu_info()
    except Exception:
        return None


def _vmem_capacity_bytes():
    """Per-core VMEM capacity; conservative 64 MiB fallback (smallest = v7x)."""
    info = _tpu_info()
    if info is not None:
        cap = getattr(info, "vmem_capacity_bytes", None)
        if isinstance(cap, int) and cap > 0:
            return cap
    return 64 << 20


def _mxu_width():
    """Preferred row-tile width: MXU dimension (256 on v6e/v7x, 128 on v5e)."""
    info = _tpu_info()
    if info is not None:
        for name in ("mxu_column_size", "mxu_columns", "mxu_width",
                     "mxu_size", "mxu_dim"):
            v = getattr(info, name, None)
            if isinstance(v, int) and v > 0:
                return v
    try:  # fallback when TpuInfo doesn't expose MXU dims
        kind = jax.devices()[0].device_kind.lower()
    except Exception:
        kind = ""
    return 128 if "v5" in kind else 256


def _row_tile(m):
    """Row tile: MXU width when M is big enough; otherwise a single tile rounded
    up to the 16-row bf16 sublane-packing granule."""
    pref = _mxu_width()
    if m >= pref:
        return pref
    return _round_up(max(m, 1), 16)


# ----------------------------------------------------------------------------
# Pallas call wrapper
# ----------------------------------------------------------------------------
@functools.partial(jax.jit,
                   static_argnames=("dim", "out_dtype", "single_buffer_weights"))
def _cvp_impl(x, params, *, dim, out_dtype, single_buffer_weights):
    B, C, H, W = x.shape
    assert H == dim and W == dim
    D = dim * dim
    M = B * C
    out_dtype = jnp.dtype(out_dtype)
    out_itemsize = out_dtype.itemsize

    TM = _row_tile(M)
    M_pad = _round_up(M, TM)
    grid_m = M_pad // TM

    # bf16 activations / weights for the matmuls (f32 accumulation inside).
    x_flat = x.reshape(M, D).astype(jnp.bfloat16)
    if M_pad != M:
        x_flat = jnp.pad(x_flat, ((0, M_pad - M), (0, 0)))

    w1a = params["w1a"].astype(jnp.bfloat16)
    w2a = params["w2a"].astype(jnp.bfloat16)
    w1b = params["w1b"].astype(jnp.bfloat16)
    w2b = params["w2b"].astype(jnp.bfloat16)
    b1a = params["b1a"].astype(jnp.float32)
    b2a = params["b2a"].astype(jnp.float32)
    b1b = params["b1b"].astype(jnp.float32)
    b2b = params["b2b"].astype(jnp.float32)

    # BlockSpecs: activations tile along M and pipeline across grid steps;
    # weights/biases use a constant index_map (always block (0, 0)) and — when
    # supported — a single pipeline buffer so they are DMA'd once and occupy
    # only one VMEM copy each.
    act_spec = pl.BlockSpec((TM, D), lambda i: (i, 0))
    if single_buffer_weights:
        w_spec = pl.BlockSpec((D, D), lambda i: (0, 0),
                              pipeline_mode=pl.Buffered(1))
        b_spec = pl.BlockSpec((1, D), lambda i: (0, 0),
                              pipeline_mode=pl.Buffered(1))
        n_wbuf = 1
    else:
        w_spec = pl.BlockSpec((D, D), lambda i: (0, 0))
        b_spec = pl.BlockSpec((1, D), lambda i: (0, 0))
        n_wbuf = 2

    out_shape = (
        jax.ShapeDtypeStruct((M_pad, D), out_dtype),  # transform_feature (flat)
        jax.ShapeDtypeStruct((M_pad, D), out_dtype),  # retransform_features (flat)
    )

    # Advisory cost model: 4 matmuls of (M_pad, D) @ (D, D).
    flops = 8 * M_pad * D * D
    bytes_accessed = (4 * D * D * 2                      # bf16 weights
                      + 4 * D * 4                        # f32 biases
                      + M_pad * D * 2                    # bf16 input
                      + 2 * M_pad * D * out_itemsize)    # two outputs
    cost = pl.CostEstimate(flops=flops, transcendentals=0,
                           bytes_accessed=bytes_accessed)

    # VMEM budget: weights/biases (n_wbuf buffers), double-buffered activation
    # tiles, plus the compiler-managed f32 intermediates (h1, t, h2, r) live in
    # the kernel body. Clamp to the actual per-core VMEM capacity.
    weight_vmem = 4 * D * D * 2 * n_wbuf
    bias_vmem = 4 * D * 4 * n_wbuf
    act_vmem = (TM * D * 2 + 2 * TM * D * out_itemsize) * 2
    body_scratch = 4 * TM * D * 4
    vmem_cap = _vmem_capacity_bytes()
    vmem_limit = min(weight_vmem + bias_vmem + act_vmem + body_scratch + (8 << 20),
                     vmem_cap)

    # Megacore sharding only pays off once activation traffic amortizes the
    # per-core weight duplication (2 TCs each DMA all 4 weights on v7x).
    weight_hbm = 4 * D * D * 2 + 4 * D * 4
    act_hbm = M_pad * D * (2 + 2 * out_itemsize)
    semantics = ("parallel",) if (grid_m >= 2 and act_hbm >= weight_hbm) \
        else ("arbitrary",)

    t_flat, r_flat = pl.pallas_call(
        _cvp_kernel,
        out_shape=out_shape,
        grid_spec=pltpu.PrefetchScalarGridSpec(
            num_scalar_prefetch=0,
            grid=(grid_m,),
            in_specs=[
                act_spec,
                w_spec, b_spec, w_spec, b_spec,
                w_spec, b_spec, w_spec, b_spec,
            ],
            out_specs=[act_spec, act_spec],
        ),
        compiler_params=pltpu.CompilerParams(
            dimension_semantics=semantics,
            vmem_limit_bytes=vmem_limit,
        ),
        cost_estimate=cost,
    )(x_flat, w1a, b1a, w2a, b2a, w1b, b1b, w2b, b2b)

    transform_feature = t_flat[:M].reshape(B, C, dim, dim)
    retransform_features = r_flat[:M].reshape(B, C, dim, dim)
    return transform_feature, retransform_features


def cycled_view_projection(x, params, *, dim, out_dtype=None):
    """Forward pass of CycledViewProjection.

    x: (B, C, dim, dim), NCHW.
    params: dict of pre-transposed weights/biases (see init_params).
    out_dtype: dtype of the returned features (default: x.dtype for PyTorch
        parity; pass jnp.bfloat16 to halve output HBM traffic).
    returns: (transform_feature, retransform_features), each (B, C, dim, dim).
    """
    out_dtype = x.dtype if out_dtype is None else jnp.dtype(out_dtype)
    try:
        out = _cvp_impl(x, params, dim=dim, out_dtype=out_dtype,
                        single_buffer_weights=True)
        jax.block_until_ready(out)
        return out
    except Exception:
        # Fallback for builds where pipeline_mode=pl.Buffered(1) is unsupported.
        out = _cvp_impl(x, params, dim=dim, out_dtype=out_dtype,
                        single_buffer_weights=False)
        jax.block_until_ready(out)
        return out


# ----------------------------------------------------------------------------
# Parameters & references
# ----------------------------------------------------------------------------
def init_params(key, dim):
    """Deterministic parameter init mimicking nn.Linear (uniform +/- 1/sqrt(fan_in)).

    Weights are stored pre-transposed: shape (D_in, D_out), so y = x @ W + b.
    Biases are stored as (1, D) rows for TPU-friendly 2-D broadcasting.
    """
    D = dim * dim
    bound = 1.0 / jnp.sqrt(jnp.float32(D))
    keys = jax.random.split(key, 8)

    def u(k, shape):
        return jax.random.uniform(k, shape, jnp.float32, minval=-bound, maxval=bound)

    return {
        # transform_module
        "w1a": u(keys[0], (D, D)), "b1a": u(keys[1], (1, D)),
        "w2a": u(keys[2], (D, D)), "b2a": u(keys[3], (1, D)),
        # retransform_module
        "w1b": u(keys[4], (D, D)), "b1b": u(keys[5], (1, D)),
        "w2b": u(keys[6], (D, D)), "b2b": u(keys[7], (1, D)),
    }


def _reference_f32(x, params, dim):
    """Pure-JAX f32 reference of the PyTorch forward."""
    B, C, H, W = x.shape
    D = dim * dim
    xf = x.reshape(B * C, D)

    def mlp(z, w1, b1, w2, b2):
        z = jnp.maximum(z @ w1 + b1, 0.0)
        z = jnp.maximum(z @ w2 + b2, 0.0)
        return z

    t = mlp(xf, params["w1a"], params["b1a"], params["w2a"], params["b2a"])
    r = mlp(t, params["w1b"], params["b1b"], params["w2b"], params["b2b"])
    return t.reshape(B, C, dim, dim), r.reshape(B, C, dim, dim)


def _reference_bf16(x, params, dim):
    """Pure-JAX reference with the same bf16-input / f32-accumulate mixed precision
    as the kernel (tight correctness check of the kernel itself)."""
    B, C, H, W = x.shape
    D = dim * dim
    xf = x.reshape(B * C, D).astype(jnp.bfloat16)

    def layer(z, w, b):
        y = jnp.dot(z.astype(jnp.bfloat16), w.astype(jnp.bfloat16),
                    preferred_element_type=jnp.float32) + b.astype(jnp.float32)
        return jnp.maximum(y, 0.0)

    h = layer(xf, params["w1a"], params["b1a"])
    t = layer(h, params["w2a"], params["b2a"])
    h = layer(t, params["w1b"], params["b1b"])
    r = layer(h, params["w2b"], params["b2b"])
    return t.reshape(B, C, dim, dim), r.reshape(B, C, dim, dim)


if __name__ == "__main__":
    # Small shapes consistent with the module: x is (B, C, dim, dim).
    # NOTE: at this toy size the kernel is launch/weight-DMA bound; benchmark the
    # structural changes (Buffered(1), bf16 outputs, megacore) at deployment M/dim.
    B, C, dim = 2, 4, 16          # dim*dim = 256 feature width, M = B*C = 8 rows
    key = jax.random.PRNGKey(0)
    kx, kp = jax.random.split(key)

    x = jax.random.normal(kx, (B, C, dim, dim), dtype=jnp.float32)
    params = init_params(kp, dim)

    t, r = cycled_view_projection(x, params, dim=dim)
    jax.block_until_ready((t, r))

    assert t.shape == (B, C, dim, dim) and r.shape == (B, C, dim, dim)

    # Tight check: kernel matches a JAX reference using the same mixed precision.
    t_b, r_b = _reference_bf16(x, params, dim)
    assert jnp.allclose(t, t_b, atol=1e-3, rtol=1e-3)
    assert jnp.allclose(r, r_b, atol=1e-3, rtol=1e-3)

    # Loose check: bf16 weights stay close to the full-f32 PyTorch semantics.
    t_f, r_f = _reference_f32(x, params, dim)
    assert jnp.allclose(t, t_f, atol=5e-2, rtol=5e-2)
    assert jnp.allclose(r, r_f, atol=5e-2, rtol=5e-2)

    print("KERNEL_OK")
</pallas_src>

<mosaic_0001>
module attributes {stable_mosaic.version = 11 : i64} {
  func.func @_cvp_kernel(%arg0: i32, %arg1: memref<16x256xbf16, #tpu.memory_space<vmem>>, %arg2: memref<256x256xbf16, #tpu.memory_space<vmem>>, %arg3: memref<1x256xf32, #tpu.memory_space<vmem>>, %arg4: memref<256x256xbf16, #tpu.memory_space<vmem>>, %arg5: memref<1x256xf32, #tpu.memory_space<vmem>>, %arg6: memref<256x256xbf16, #tpu.memory_space<vmem>>, %arg7: memref<1x256xf32, #tpu.memory_space<vmem>>, %arg8: memref<256x256xbf16, #tpu.memory_space<vmem>>, %arg9: memref<1x256xf32, #tpu.memory_space<vmem>>, %arg10: memref<16x256xf32, #tpu.memory_space<vmem>>, %arg11: memref<16x256xf32, #tpu.memory_space<vmem>>) attributes {dimension_semantics = [#tpu.dimension_semantics<arbitrary>], iteration_bounds = array<i64: 1>, scalar_prefetch = 0 : i64, scratch_operands = 0 : i64, tpu.core_type = #tpu.core_type<tc>, window_params = [{transform_indices = @transform_0, window_bounds = array<i64: 16, 256>}, {pipeline_mode = #tpu.pipeline_mode<synchronous>, transform_indices = @transform_1, window_bounds = array<i64: 256, 256>}, {pipeline_mode = #tpu.pipeline_mode<synchronous>, transform_indices = @transform_2, window_bounds = array<i64: 1, 256>}, {pipeline_mode = #tpu.pipeline_mode<synchronous>, transform_indices = @transform_3, window_bounds = array<i64: 256, 256>}, {pipeline_mode = #tpu.pipeline_mode<synchronous>, transform_indices = @transform_4, window_bounds = array<i64: 1, 256>}, {pipeline_mode = #tpu.pipeline_mode<synchronous>, transform_indices = @transform_5, window_bounds = array<i64: 256, 256>}, {pipeline_mode = #tpu.pipeline_mode<synchronous>, transform_indices = @transform_6, window_bounds = array<i64: 1, 256>}, {pipeline_mode = #tpu.pipeline_mode<synchronous>, transform_indices = @transform_7, window_bounds = array<i64: 256, 256>}, {pipeline_mode = #tpu.pipeline_mode<synchronous>, transform_indices = @transform_8, window_bounds = array<i64: 1, 256>}, {transform_indices = @transform_9, window_bounds = array<i64: 16, 256>}, {transform_indices = @transform_10, window_bounds = array<i64: 16, 256>}]} {
    %c0 = arith.constant 0 : index
    %c0_0 = arith.constant 0 : index
    %0 = vector.load %arg1[%c0, %c0_0] : memref<16x256xbf16, #tpu.memory_space<vmem>>, vector<16x256xbf16>
    %c0_1 = arith.constant 0 : index
    %c0_2 = arith.constant 0 : index
    %1 = vector.load %arg2[%c0_1, %c0_2] : memref<256x256xbf16, #tpu.memory_space<vmem>>, vector<256x256xbf16>
    %cst = arith.constant dense<0.000000e+00> : vector<16x256xf32>
    %2 = tpu.matmul %0, %1, %cst {dimension_numbers = #tpu.dot_dimension_numbers<[1], [0], [0], [1], [0, 0, 1, 1], [], []>} : vector<16x256xbf16>, vector<256x256xbf16>, vector<16x256xf32> -> vector<16x256xf32>
    %c0_3 = arith.constant 0 : index
    %c0_4 = arith.constant 0 : index
    %3 = vector.load %arg3[%c0_3, %c0_4] : memref<1x256xf32, #tpu.memory_space<vmem>>, vector<1x256xf32>
    %4 = vector.broadcast %3 : vector<1x256xf32> to vector<16x256xf32>
    %5 = arith.addf %2, %4 : vector<16x256xf32>
    %cst_5 = arith.constant 0.000000e+00 : f32
    %6 = vector.broadcast %cst_5 : f32 to vector<16x256xf32>
    %7 = arith.maximumf %5, %6 : vector<16x256xf32>
    %8 = arith.truncf %7 : vector<16x256xf32> to vector<16x256xbf16>
    %c0_6 = arith.constant 0 : index
    %c0_7 = arith.constant 0 : index
    %9 = vector.load %arg4[%c0_6, %c0_7] : memref<256x256xbf16, #tpu.memory_space<vmem>>, vector<256x256xbf16>
    %cst_8 = arith.constant dense<0.000000e+00> : vector<16x256xf32>
    %10 = tpu.matmul %8, %9, %cst_8 {dimension_numbers = #tpu.dot_dimension_numbers<[1], [0], [0], [1], [0, 0, 1, 1], [], []>} : vector<16x256xbf16>, vector<256x256xbf16>, vector<16x256xf32> -> vector<16x256xf32>
    %c0_9 = arith.constant 0 : index
    %c0_10 = arith.constant 0 : index
    %11 = vector.load %arg5[%c0_9, %c0_10] : memref<1x256xf32, #tpu.memory_space<vmem>>, vector<1x256xf32>
    %12 = vector.broadcast %11 : vector<1x256xf32> to vector<16x256xf32>
    %13 = arith.addf %10, %12 : vector<16x256xf32>
    %cst_11 = arith.constant 0.000000e+00 : f32
    %14 = vector.broadcast %cst_11 : f32 to vector<16x256xf32>
    %15 = arith.maximumf %13, %14 : vector<16x256xf32>
    %c0_12 = arith.constant 0 : index
    %c0_13 = arith.constant 0 : index
    %16 = vector.load %arg10[%c0_12, %c0_13] : memref<16x256xf32, #tpu.memory_space<vmem>>, vector<16x256xf32>
    tpu.vector_store %arg10[%c0_12, %c0_13], %15 {strides = array<i32>} : memref<16x256xf32, #tpu.memory_space<vmem>>, vector<16x256xf32>,
    %17 = arith.truncf %15 : vector<16x256xf32> to vector<16x256xbf16>
    %c0_14 = arith.constant 0 : index
    %c0_15 = arith.constant 0 : index
    %18 = vector.load %arg6[%c0_14, %c0_15] : memref<256x256xbf16, #tpu.memory_space<vmem>>, vector<256x256xbf16>
    %cst_16 = arith.constant dense<0.000000e+00> : vector<16x256xf32>
    %19 = tpu.matmul %17, %18, %cst_16 {dimension_numbers = #tpu.dot_dimension_numbers<[1], [0], [0], [1], [0, 0, 1, 1], [], []>} : vector<16x256xbf16>, vector<256x256xbf16>, vector<16x256xf32> -> vector<16x256xf32>
    %c0_17 = arith.constant 0 : index
    %c0_18 = arith.constant 0 : index
    %20 = vector.load %arg7[%c0_17, %c0_18] : memref<1x256xf32, #tpu.memory_space<vmem>>, vector<1x256xf32>
    %21 = vector.broadcast %20 : vector<1x256xf32> to vector<16x256xf32>
    %22 = arith.addf %19, %21 : vector<16x256xf32>
    %cst_19 = arith.constant 0.000000e+00 : f32
    %23 = vector.broadcast %cst_19 : f32 to vector<16x256xf32>
    %24 = arith.maximumf %22, %23 : vector<16x256xf32>
    %25 = arith.truncf %24 : vector<16x256xf32> to vector<16x256xbf16>
    %c0_20 = arith.constant 0 : index
    %c0_21 = arith.constant 0 : index
    %26 = vector.load %arg8[%c0_20, %c0_21] : memref<256x256xbf16, #tpu.memory_space<vmem>>, vector<256x256xbf16>
    %cst_22 = arith.constant dense<0.000000e+00> : vector<16x256xf32>
    %27 = tpu.matmul %25, %26, %cst_22 {dimension_numbers = #tpu.dot_dimension_numbers<[1], [0], [0], [1], [0, 0, 1, 1], [], []>} : vector<16x256xbf16>, vector<256x256xbf16>, vector<16x256xf32> -> vector<16x256xf32>
    %c0_23 = arith.constant 0 : index
    %c0_24 = arith.constant 0 : index
    %28 = vector.load %arg9[%c0_23, %c0_24] : memref<1x256xf32, #tpu.memory_space<vmem>>, vector<1x256xf32>
    %29 = vector.broadcast %28 : vector<1x256xf32> to vector<16x256xf32>
    %30 = arith.addf %27, %29 : vector<16x256xf32>
    %cst_25 = arith.constant 0.000000e+00 : f32
    %31 = vector.broadcast %cst_25 : f32 to vector<16x256xf32>
    %32 = arith.maximumf %30, %31 : vector<16x256xf32>
    %c0_26 = arith.constant 0 : index
    %c0_27 = arith.constant 0 : index
    %33 = vector.load %arg11[%c0_26, %c0_27] : memref<16x256xf32, #tpu.memory_space<vmem>>, vector<16x256xf32>
    tpu.vector_store %arg11[%c0_26, %c0_27], %32 {strides = array<i32>} : memref<16x256xf32, #tpu.memory_space<vmem>>, vector<16x256xf32>,
    return
  }
  func.func @transform_0(%arg0: i32) -> (i32, i32) {
    %c0_i32 = arith.constant 0 : i32
    %c0_i32_0 = arith.constant 0 : i32
    return %arg0, %c0_i32 : i32, i32
  }
  func.func @transform_1(%arg0: i32) -> (i32, i32) {
    %c0_i32 = arith.constant 0 : i32
    %c0_i32_0 = arith.constant 0 : i32
    %c0_i32_1 = arith.constant 0 : i32
    return %c0_i32, %c0_i32_0 : i32, i32
  }
  func.func @transform_2(%arg0: i32) -> (i32, i32) {
    %c0_i32 = arith.constant 0 : i32
    %c0_i32_0 = arith.constant 0 : i32
    %c0_i32_1 = arith.constant 0 : i32
    return %c0_i32, %c0_i32_0 : i32, i32
  }
  func.func @transform_3(%arg0: i32) -> (i32, i32) {
    %c0_i32 = arith.constant 0 : i32
    %c0_i32_0 = arith.constant 0 : i32
    %c0_i32_1 = arith.constant 0 : i32
    return %c0_i32, %c0_i32_0 : i32, i32
  }
  func.func @transform_4(%arg0: i32) -> (i32, i32) {
    %c0_i32 = arith.constant 0 : i32
    %c0_i32_0 = arith.constant 0 : i32
    %c0_i32_1 = arith.constant 0 : i32
    return %c0_i32, %c0_i32_0 : i32, i32
  }
  func.func @transform_5(%arg0: i32) -> (i32, i32) {
    %c0_i32 = arith.constant 0 : i32
    %c0_i32_0 = arith.constant 0 : i32
    %c0_i32_1 = arith.constant 0 : i32
    return %c0_i32, %c0_i32_0 : i32, i32
  }
  func.func @transform_6(%arg0: i32) -> (i32, i32) {
    %c0_i32 = arith.constant 0 : i32
    %c0_i32_0 = arith.constant 0 : i32
    %c0_i32_1 = arith.constant 0 : i32
    return %c0_i32, %c0_i32_0 : i32, i32
  }
  func.func @transform_7(%arg0: i32) -> (i32, i32) {
    %c0_i32 = arith.constant 0 : i32
    %c0_i32_0 = arith.constant 0 : i32
    %c0_i32_1 = arith.constant 0 : i32
    return %c0_i32, %c0_i32_0 : i32, i32
  }
  func.func @transform_8(%arg0: i32) -> (i32, i32) {
    %c0_i32 = arith.constant 0 : i32
    %c0_i32_0 = arith.constant 0 : i32
    %c0_i32_1 = arith.constant 0 : i32
    return %c0_i32, %c0_i32_0 : i32, i32
  }
  func.func @transform_9(%arg0: i32) -> (i32, i32) {
    %c0_i32 = arith.constant 0 : i32
    %c0_i32_0 = arith.constant 0 : i32
    return %arg0, %c0_i32 : i32, i32
  }
  func.func @transform_10(%arg0: i32) -> (i32, i32) {
    %c0_i32 = arith.constant 0 : i32
    %c0_i32_0 = arith.constant 0 : i32
    return %arg0, %c0_i32 : i32, i32
  }
}

module attributes {stable_mosaic.version = 11 : i64} {
  func.func @_cvp_kernel(%arg0: i32, %arg1: memref<16x256xbf16, #tpu.memory_space<vmem>>, %arg2: memref<256x256xbf16, #tpu.memory_space<vmem>>, %arg3: memref<1x256xf32, #tpu.memory_space<vmem>>, %arg4: memref<256x256xbf16, #tpu.memory_space<vmem>>, %arg5: memref<1x256xf32, #tpu.memory_space<vmem>>, %arg6: memref<256x256xbf16, #tpu.memory_space<vmem>>, %arg7: memref<1x256xf32, #tpu.memory_space<vmem>>, %arg8: memref<256x256xbf16, #tpu.memory_space<vmem>>, %arg9: memref<1x256xf32, #tpu.memory_space<vmem>>, %arg10: memref<16x256xf32, #tpu.memory_space<vmem>>, %arg11: memref<16x256xf32, #tpu.memory_space<vmem>>) attributes {dimension_semantics = [#tpu.dimension_semantics<arbitrary>], iteration_bounds = array<i64: 1>, scalar_prefetch = 0 : i64, scratch_operands = 0 : i64, tpu.core_type = #tpu.core_type<tc>, window_params = [{transform_indices = @transform_0, window_bounds = array<i64: 16, 256>}, {pipeline_mode = #tpu.pipeline_mode<synchronous>, transform_indices = @transform_1, window_bounds = array<i64: 256, 256>}, {pipeline_mode = #tpu.pipeline_mode<synchronous>, transform_indices = @transform_2, window_bounds = array<i64: 1, 256>}, {pipeline_mode = #tpu.pipeline_mode<synchronous>, transform_indices = @transform_3, window_bounds = array<i64: 256, 256>}, {pipeline_mode = #tpu.pipeline_mode<synchronous>, transform_indices = @transform_4, window_bounds = array<i64: 1, 256>}, {pipeline_mode = #tpu.pipeline_mode<synchronous>, transform_indices = @transform_5, window_bounds = array<i64: 256, 256>}, {pipeline_mode = #tpu.pipeline_mode<synchronous>, transform_indices = @transform_6, window_bounds = array<i64: 1, 256>}, {pipeline_mode = #tpu.pipeline_mode<synchronous>, transform_indices = @transform_7, window_bounds = array<i64: 256, 256>}, {pipeline_mode = #tpu.pipeline_mode<synchronous>, transform_indices = @transform_8, window_bounds = array<i64: 1, 256>}, {transform_indices = @transform_9, window_bounds = array<i64: 16, 256>}, {transform_indices = @transform_10, window_bounds = array<i64: 16, 256>}]} {
    %c0 = arith.constant 0 : index
    %c0_0 = arith.constant 0 : index
    %0 = vector.load %arg1[%c0, %c0_0] : memref<16x256xbf16, #tpu.memory_space<vmem>>, vector<16x256xbf16>
    %c0_1 = arith.constant 0 : index
    %c0_2 = arith.constant 0 : index
    %1 = vector.load %arg2[%c0_1, %c0_2] : memref<256x256xbf16, #tpu.memory_space<vmem>>, vector<256x256xbf16>
    %cst = arith.constant dense<0.000000e+00> : vector<16x256xf32>
    %2 = tpu.matmul %0, %1, %cst {dimension_numbers = #tpu.dot_dimension_numbers<[1], [0], [0], [1], [0, 0, 1, 1], [], []>} : vector<16x256xbf16>, vector<256x256xbf16>, vector<16x256xf32> -> vector<16x256xf32>
    %c0_3 = arith.constant 0 : index
    %c0_4 = arith.constant 0 : index
    %3 = vector.load %arg3[%c0_3, %c0_4] : memref<1x256xf32, #tpu.memory_space<vmem>>, vector<1x256xf32>
    %4 = vector.broadcast %3 : vector<1x256xf32> to vector<16x256xf32>
    %5 = arith.addf %2, %4 : vector<16x256xf32>
    %cst_5 = arith.constant 0.000000e+00 : f32
    %6 = vector.broadcast %cst_5 : f32 to vector<16x256xf32>
    %7 = arith.maximumf %5, %6 : vector<16x256xf32>
    %8 = arith.truncf %7 : vector<16x256xf32> to vector<16x256xbf16>
    %c0_6 = arith.constant 0 : index
    %c0_7 = arith.constant 0 : index
    %9 = vector.load %arg4[%c0_6, %c0_7] : memref<256x256xbf16, #tpu.memory_space<vmem>>, vector<256x256xbf16>
    %cst_8 = arith.constant dense<0.000000e+00> : vector<16x256xf32>
    %10 = tpu.matmul %8, %9, %cst_8 {dimension_numbers = #tpu.dot_dimension_numbers<[1], [0], [0], [1], [0, 0, 1, 1], [], []>} : vector<16x256xbf16>, vector<256x256xbf16>, vector<16x256xf32> -> vector<16x256xf32>
    %c0_9 = arith.constant 0 : index
    %c0_10 = arith.constant 0 : index
    %11 = vector.load %arg5[%c0_9, %c0_10] : memref<1x256xf32, #tpu.memory_space<vmem>>, vector<1x256xf32>
    %12 = vector.broadcast %11 : vector<1x256xf32> to vector<16x256xf32>
    %13 = arith.addf %10, %12 : vector<16x256xf32>
    %cst_11 = arith.constant 0.000000e+00 : f32
    %14 = vector.broadcast %cst_11 : f32 to vector<16x256xf32>
    %15 = arith.maximumf %13, %14 : vector<16x256xf32>
    %c0_12 = arith.constant 0 : index
    %c0_13 = arith.constant 0 : index
    %16 = vector.load %arg10[%c0_12, %c0_13] : memref<16x256xf32, #tpu.memory_space<vmem>>, vector<16x256xf32>
    tpu.vector_store %arg10[%c0_12, %c0_13], %15 {strides = array<i32>} : memref<16x256xf32, #tpu.memory_space<vmem>>, vector<16x256xf32>,
    %17 = arith.truncf %15 : vector<16x256xf32> to vector<16x256xbf16>
    %c0_14 = arith.constant 0 : index
    %c0_15 = arith.constant 0 : index
    %18 = vector.load %arg6[%c0_14, %c0_15] : memref<256x256xbf16, #tpu.memory_space<vmem>>, vector<256x256xbf16>
    %cst_16 = arith.constant dense<0.000000e+00> : vector<16x256xf32>
    %19 = tpu.matmul %17, %18, %cst_16 {dimension_numbers = #tpu.dot_dimension_numbers<[1], [0], [0], [1], [0, 0, 1, 1], [], []>} : vector<16x256xbf16>, vector<256x256xbf16>, vector<16x256xf32> -> vector<16x256xf32>
    %c0_17 = arith.constant 0 : index
    %c0_18 = arith.constant 0 : index
    %20 = vector.load %arg7[%c0_17, %c0_18] : memref<1x256xf32, #tpu.memory_space<vmem>>, vector<1x256xf32>
    %21 = vector.broadcast %20 : vector<1x256xf32> to vector<16x256xf32>
    %22 = arith.addf %19, %21 : vector<16x256xf32>
    %cst_19 = arith.constant 0.000000e+00 : f32
    %23 = vector.broadcast %cst_19 : f32 to vector<16x256xf32>
    %24 = arith.maximumf %22, %23 : vector<16x256xf32>
    %25 = arith.truncf %24 : vector<16x256xf32> to vector<16x256xbf16>
    %c0_20 = arith.constant 0 : index
    %c0_21 = arith.constant 0 : index
    %26 = vector.load %arg8[%c0_20, %c0_21] : memref<256x256xbf16, #tpu.memory_space<vmem>>, vector<256x256xbf16>
    %cst_22 = arith.constant dense<0.000000e+00> : vector<16x256xf32>
    %27 = tpu.matmul %25, %26, %cst_22 {dimension_numbers = #tpu.dot_dimension_numbers<[1], [0], [0], [1], [0, 0, 1, 1], [], []>} : vector<16x256xbf16>, vector<256x256xbf16>, vector<16x256xf32> -> vector<16x256xf32>
    %c0_23 = arith.constant 0 : index
    %c0_24 = arith.constant 0 : index
    %28 = vector.load %arg9[%c0_23, %c0_24] : memref<1x256xf32, #tpu.memory_space<vmem>>, vector<1x256xf32>
    %29 = vector.broadcast %28 : vector<1x256xf32> to vector<16x256xf32>
    %30 = arith.addf %27, %29 : vector<16x256xf32>
    %cst_25 = arith.constant 0.000000e+00 : f32
    %31 = vector.broadcast %cst_25 : f32 to vector<16x256xf32>
    %32 = arith.maximumf %30, %31 : vector<16x256xf32>
    %c0_26 = arith.constant 0 : index
    %c0_27 = arith.constant 0 : index
    %33 = vector.load %arg11[%c0_26, %c0_27] : memref<16x256xf32, #tpu.memory_space<vmem>>, vector<16x256xf32>
    tpu.vector_store %arg11[%c0_26, %c0_27], %32 {strides = array<i32>} : memref<16x256xf32, #tpu.memory_space<vmem>>, vector<16x256xf32>,
    return
  }
  func.func @transform_0(%arg0: i32) -> (i32, i32) {
    %c0_i32 = arith.constant 0 : i32
    %c0_i32_0 = arith.constant 0 : i32
    return %arg0, %c0_i32 : i32, i32
  }
  func.func @transform_1(%arg0: i32) -> (i32, i32) {
    %c0_i32 = arith.constant 0 : i32
    %c0_i32_0 = arith.constant 0 : i32
    %c0_i32_1 = arith.constant 0 : i32
    return %c0_i32, %c0_i32_0 : i32, i32
  }
  func.func @transform_2(%arg0: i32) -> (i32, i32) {
    %c0_i32 = arith.constant 0 : i32
    %c0_i32_0 = arith.constant 0 : i32
    %c0_i32_1 = arith.constant 0 : i32
    return %c0_i32, %c0_i32_0 : i32, i32
  }
  func.func @transform_3(%arg0: i32) -> (i32, i32) {
    %c0_i32 = arith.constant 0 : i32
    %c0_i32_0 = arith.constant 0 : i32
    %c0_i32_1 = arith.constant 0 : i32
    return %c0_i32, %c0_i32_0 : i32, i32
  }
  func.func @transform_4(%arg0: i32) -> (i32, i32) {
    %c0_i32 = arith.constant 0 : i32
    %c0_i32_0 = arith.constant 0 : i32
    %c0_i32_1 = arith.constant 0 : i32
    return %c0_i32, %c0_i32_0 : i32, i32
  }
  func.func @transform_5(%arg0: i32) -> (i32, i32) {
    %c0_i32 = arith.constant 0 : i32
    %c0_i32_0 = arith.constant 0 : i32
    %c0_i32_1 = arith.constant 0 : i32
    return %c0_i32, %c0_i32_0 : i32, i32
  }
  func.func @transform_6(%arg0: i32) -> (i32, i32) {
    %c0_i32 = arith.constant 0 : i32
    %c0_i32_0 = arith.constant 0 : i32
    %c0_i32_1 = arith.constant 0 : i32
    return %c0_i32, %c0_i32_0 : i32, i32
  }
  func.func @transform_7(%arg0: i32) -> (i32, i32) {
    %c0_i32 = arith.constant 0 : i32
    %c0_i32_0 = arith.constant 0 : i32
    %c0_i32_1 = arith.constant 0 : i32
    return %c0_i32, %c0_i32_0 : i32, i32
  }
  func.func @transform_8(%arg0: i32) -> (i32, i32) {
    %c0_i32 = arith.constant 0 : i32
    %c0_i32_0 = arith.constant 0 : i32
    %c0_i32_1 = arith.constant 0 : i32
    return %c0_i32, %c0_i32_0 : i32, i32
  }
  func.func @transform_9(%arg0: i32) -> (i32, i32) {
    %c0_i32 = arith.constant 0 : i32
    %c0_i32_0 = arith.constant 0 : i32
    return %arg0, %c0_i32 : i32, i32
  }
  func.func @transform_10(%arg0: i32) -> (i32, i32) {
    %c0_i32 = arith.constant 0 : i32
    %c0_i32_0 = arith.constant 0 : i32
    return %arg0, %c0_i32 : i32, i32
  }
}

</mosaic_0001>

<bundles_post_ra>
// kernel: _cvp_impl.1
= control target key start
LH: loop header
LB: loop body
LE: loop exit
PB: predicated region body
PF: predicated region fallthrough
CT: control target
= control target key end

     0   :  { %s1890_s1 = inlined_call_operand.vmem [shape: bf16[256,256], index: 1, kind: input, shape index: {}]   ;;  %s1891_s0 = inlined_call_operand.vmem [shape: bf16[16,256], index: 0, kind: input, shape index: {}]   ;;  %s1892_s3 = inlined_call_operand.vmem [shape: bf16[256,256], index: 3, kind: input, shape index: {}]   ;;  %s1893_s5 = inlined_call_operand.vmem [shape: bf16[256,256], index: 5, kind: input, shape index: {}]   ;;  %s1894_s2 = inlined_call_operand.vmem [shape: f32[1,256], index: 2, kind: input, shape index: {}]   ;;  %s1895_s7 = inlined_call_operand.vmem [shape: bf16[256,256], index: 7, kind: input, shape index: {}]   ;;  %s1896_s4 = inlined_call_operand.vmem [shape: f32[1,256], index: 4, kind: input, shape index: {}]   ;;  %s1897_s9 = inlined_call_operand.vmem [shape: f32[16,256], index: 9, kind: output, shape index: {0}]   ;;  %s1898_s6 = inlined_call_operand.vmem [shape: f32[1,256], index: 6, kind: input, shape index: {}]   ;;  %s1899_s8 = inlined_call_operand.vmem [shape: f32[1,256], index: 8, kind: input, shape index: {}]   ;;  %s1900_s10 = inlined_call_operand.vmem [shape: f32[16,256], index: 10, kind: output, shape index: {1}]  }
   0x1   :  { %v1202_v0 = vld [vmem:[%s1890_s1 + $0x74] ss:$8 sps:$4 sm:$0xff]   ;;  %v1204_v1 = vld [vmem:[%s1890_s1 + $0x70] ss:$8 sps:$4 sm:$0xff]   ;;  %v1205_v2 = vld [vmem:[%s1890_s1 + $0x64] ss:$8 sps:$4 sm:$0xff]  }
   0x2   :  { %250 = vmatprep.subr.bf16.mxu0 %v1202_v0  ;;  %v1207_v3 = vld [vmem:[%s1890_s1 + $0x60] ss:$8 sps:$4 sm:$0xff]   ;;  %v1208_v4 = vld [vmem:[%s1890_s1 + $0x54] ss:$8 sps:$4 sm:$0xff]   ;;  %v1210_v5 = vld [vmem:[%s1890_s1 + $0x50] ss:$8 sps:$4 sm:$0xff]  }
   0x3   :  { %251 = vmatpush1.bf16.msra.mxu0 %v1204_v1  ;;  %v1211_v6 = vld [vmem:[%s1890_s1 + $0x44] ss:$8 sps:$4 sm:$0xff]   ;;  %v1213_v7 = vld [vmem:[%s1890_s1 + $0x40] ss:$8 sps:$4 sm:$0xff]   ;;  %v1214_v8 = vld [vmem:[%s1890_s1 + $0x34] ss:$8 sps:$4 sm:$0xff]  }
   0x4   :  { %252 = vmatprep.subr.bf16.mxu0 %v1205_v2  ;;  %v1216_v9 = vld [vmem:[%s1890_s1 + $0x30] ss:$8 sps:$4 sm:$0xff]   ;;  %v1217_v10 = vld [vmem:[%s1890_s1 + $0x24] ss:$8 sps:$4 sm:$0xff]   ;;  %v1219_v11 = vld [vmem:[%s1890_s1 + $0x20] ss:$8 sps:$4 sm:$0xff]  }
   0x5   :  { %v1220_v12 = vld [vmem:[%s1890_s1 + $0x14] ss:$8 sps:$4 sm:$0xff]   ;;  %v1222_v13 = vld [vmem:[%s1890_s1 + $0x10] ss:$8 sps:$4 sm:$0xff]   ;;  %v1223_v14 = vld [vmem:[%s1890_s1 + $0x4] ss:$8 sps:$4 sm:$0xff]  }
   0x6   :  { %v1252_v15 = vld [vmem:[%s1891_s0 + $0x4] ss:$8 sps:$4 sm:$0xff]   ;;  %v1253_v16 = vld [vmem:[%s1892_s3 + $0x74] ss:$8 sps:$4 sm:$0xff]   ;;  %v1255_v17 = vld [vmem:[%s1892_s3 + $0x70] ss:$8 sps:$4 sm:$0xff]  }
   0x7   :  { %253 = vmatpush1.bf16.msra.mxu0 %v1207_v3  ;;  %282 = vmatprep.mubr.bf16.mxu0 %v1252_v15  ;;  %v1256_v18 = vld [vmem:[%s1892_s3 + $0x64] ss:$8 sps:$4 sm:$0xff]   ;;  %v1258_v19 = vld [vmem:[%s1892_s3 + $0x60] ss:$8 sps:$4 sm:$0xff]   ;;  %v1259_v21 = vld [vmem:[%s1892_s3 + $0x54] ss:$8 sps:$4 sm:$0xff]  }
   0x8   :  { %254 = vmatprep.subr.bf16.mxu0 %v1208_v4  ;;  %503 = vmatprep.subr.bf16.mxu1 %v1253_v16  ;;  %v1225_v20 = vld [vmem:[%s1890_s1] ss:$8 sps:$4 sm:$0xff]   ;;  %v1226_v22 = vld [vmem:[%s1890_s1 + $0xf4] ss:$8 sps:$4 sm:$0xff]   ;;  %v1261_v23 = vld [vmem:[%s1892_s3 + $0x50] ss:$8 sps:$4 sm:$0xff]  }
   0x9   :  { %504 = vmatpush1.bf16.msra.mxu1 %v1255_v17  ;;  %v1228_v24 = vld [vmem:[%s1890_s1 + $0xf0] ss:$8 sps:$4 sm:$0xff]   ;;  %v1262_v25 = vld [vmem:[%s1892_s3 + $0x44] ss:$8 sps:$4 sm:$0xff]   ;;  %v1264_v27 = vld [vmem:[%s1892_s3 + $0x40] ss:$8 sps:$4 sm:$0xff]  }
   0xa   :  { %505 = vmatprep.subr.bf16.mxu1 %v1256_v18  ;;  %v1229_v26 = vld [vmem:[%s1890_s1 + $0xe4] ss:$8 sps:$4 sm:$0xff]   ;;  %v1231_v28 = vld [vmem:[%s1890_s1 + $0xe0] ss:$8 sps:$4 sm:$0xff]   ;;  %v1265_v29 = vld [vmem:[%s1892_s3 + $0x34] ss:$8 sps:$4 sm:$0xff]  }
   0xb   :  { %255 = vmatpush1.bf16.msra.mxu0 %v1210_v5  ;;  %v1232_v30 = vld [vmem:[%s1890_s1 + $0xd4] ss:$8 sps:$4 sm:$0xff]   ;;  %v1267_v31 = vld [vmem:[%s1892_s3 + $0x30] ss:$8 sps:$4 sm:$0xff]   ;;  %v1268_v33 = vld [vmem:[%s1892_s3 + $0x24] ss:$8 sps:$4 sm:$0xff]  }
   0xc   :  { %256 = vmatprep.subr.bf16.mxu0 %v1211_v6  ;;  %v1234_v32 = vld [vmem:[%s1890_s1 + $0xd0] ss:$8 sps:$4 sm:$0xff]   ;;  %v1235_v34 = vld [vmem:[%s1890_s1 + $0xc4] ss:$8 sps:$4 sm:$0xff]   ;;  %v1270_v35 = vld [vmem:[%s1892_s3 + $0x20] ss:$8 sps:$4 sm:$0xff]  }
   0xd   :  { %506 = vmatpush1.bf16.msra.mxu1 %v1258_v19  ;;  %v1237_v36 = vld [vmem:[%s1890_s1 + $0xc0] ss:$8 sps:$4 sm:$0xff]   ;;  %v1271_v37 = vld [vmem:[%s1892_s3 + $0x14] ss:$8 sps:$4 sm:$0xff]   ;;  %v1273_v39 = vld [vmem:[%s1892_s3 + $0x10] ss:$8 sps:$4 sm:$0xff]  }
   0xe   :  { %507 = vmatprep.subr.bf16.mxu1 %v1259_v21  ;;  %v1238_v38 = vld [vmem:[%s1890_s1 + $0xb4] ss:$8 sps:$4 sm:$0xff]   ;;  %v1240_v40 = vld [vmem:[%s1890_s1 + $0xb0] ss:$8 sps:$4 sm:$0xff]   ;;  %v1274_v41 = vld [vmem:[%s1892_s3 + $0x4] ss:$8 sps:$4 sm:$0xff]  }
   0xf   :  { %257 = vmatpush1.bf16.msra.mxu0 %v1213_v7  ;;  %v1241_v42 = vld [vmem:[%s1890_s1 + $0xa4] ss:$8 sps:$4 sm:$0xff]   ;;  %v1276_v43 = vld [vmem:[%s1892_s3] ss:$8 sps:$4 sm:$0xff]   ;;  %v1277_v45 = vld [vmem:[%s1892_s3 + $0xf4] ss:$8 sps:$4 sm:$0xff]  }
  0x10   :  { %258 = vmatprep.subr.bf16.mxu0 %v1214_v8  ;;  %v1243_v44 = vld [vmem:[%s1890_s1 + $0xa0] ss:$8 sps:$4 sm:$0xff]   ;;  %v1244_v46 = vld [vmem:[%s1890_s1 + $0x94] ss:$8 sps:$4 sm:$0xff]   ;;  %v1279_v47 = vld [vmem:[%s1892_s3 + $0xf0] ss:$8 sps:$4 sm:$0xff]  }
  0x11   :  { %508 = vmatpush1.bf16.msra.mxu1 %v1261_v23  ;;  %v1246_v48 = vld [vmem:[%s1890_s1 + $0x90] ss:$8 sps:$4 sm:$0xff]   ;;  %v1280_v49 = vld [vmem:[%s1892_s3 + $0xe4] ss:$8 sps:$4 sm:$0xff]   ;;  %v1282_v51 = vld [vmem:[%s1892_s3 + $0xe0] ss:$8 sps:$4 sm:$0xff]  }
  0x12   :  { %509 = vmatprep.subr.bf16.mxu1 %v1262_v25  ;;  %v1247_v50 = vld [vmem:[%s1890_s1 + $0x84] ss:$8 sps:$4 sm:$0xff]   ;;  %v1249_v52 = vld [vmem:[%s1890_s1 + $0x80] ss:$8 sps:$4 sm:$0xff]   ;;  %v1283_v53 = vld [vmem:[%s1892_s3 + $0xd4] ss:$8 sps:$4 sm:$0xff]  }
  0x13   :  { %259 = vmatpush1.bf16.msra.mxu0 %v1216_v9  ;;  %v1250_v54 = vld [vmem:[%s1891_s0] ss:$8 sps:$4 sm:$0xff]   ;;  %v1285_v55 = vld [vmem:[%s1892_s3 + $0xd0] ss:$8 sps:$4 sm:$0xff]   ;;  %v1286_v56 = vld [vmem:[%s1892_s3 + $0xc4] ss:$8 sps:$4 sm:$0xff]  }
  0x14   :  { %260 = vmatprep.subr.bf16.mxu0 %v1217_v10  ;;  %v1288_v57 = vld [vmem:[%s1892_s3 + $0xc0] ss:$8 sps:$4 sm:$0xff]   ;;  %v1289_v58 = vld [vmem:[%s1892_s3 + $0xb4] ss:$8 sps:$4 sm:$0xff]   ;;  %v1291_v59 = vld [vmem:[%s1892_s3 + $0xb0] ss:$8 sps:$4 sm:$0xff]  }
  0x15   :  { %510 = vmatpush1.bf16.msra.mxu1 %v1264_v27  ;;  %v1292_v60 = vld [vmem:[%s1892_s3 + $0xa4] ss:$8 sps:$4 sm:$0xff]   ;;  %v1294_v61 = vld [vmem:[%s1892_s3 + $0xa0] ss:$8 sps:$4 sm:$0xff]   ;;  %v1295_v62 = vld [vmem:[%s1892_s3 + $0x94] ss:$8 sps:$4 sm:$0xff]  }
  0x16   :  { %511 = vmatprep.subr.bf16.mxu1 %v1265_v29  ;;  %v1297_v63 = vld [vmem:[%s1892_s3 + $0x90] ss:$8 sps:$4 sm:$0xff]   ;;  %v1298_v0 = vld [vmem:[%s1892_s3 + $0x84] ss:$8 sps:$4 sm:$0xff]   ;;  %v1300_v1 = vld [vmem:[%s1892_s3 + $0x80] ss:$8 sps:$4 sm:$0xff]  }
  0x17   :  { %261 = vmatpush1.bf16.msra.mxu0 %v1219_v11  ;;  %v1301_v2 = vld [vmem:[%s1893_s5 + $0x70] ss:$8 sps:$4 sm:$0xff]   ;;  %v1303_v3 = vld [vmem:[%s1893_s5 + $0x74] ss:$8 sps:$4 sm:$0xff]   ;;  %v1306_v4 = vld [vmem:[%s1893_s5 + $0x64] ss:$8 sps:$4 sm:$0xff]  }
  0x18   :  { %262 = vmatprep.subr.bf16.mxu0 %v1220_v12  ;;  %v1304_v5 = vld [vmem:[%s1893_s5 + $0x60] ss:$8 sps:$4 sm:$0xff]   ;;  %v1309_v6 = vld [vmem:[%s1893_s5 + $0x54] ss:$8 sps:$4 sm:$0xff]   ;;  %v1307_v7 = vld [vmem:[%s1893_s5 + $0x50] ss:$8 sps:$4 sm:$0xff]  }
  0x19   :  { %512 = vmatpush1.bf16.msra.mxu1 %v1267_v31  ;;  %v1312_v8 = vld [vmem:[%s1893_s5 + $0x44] ss:$8 sps:$4 sm:$0xff]   ;;  %v1310_v9 = vld [vmem:[%s1893_s5 + $0x40] ss:$8 sps:$4 sm:$0xff]   ;;  %v1315_v10 = vld [vmem:[%s1893_s5 + $0x34] ss:$8 sps:$4 sm:$0xff]  }
  0x1a   :  { %513 = vmatprep.subr.bf16.mxu1 %v1268_v33  ;;  %v1313_v11 = vld [vmem:[%s1893_s5 + $0x30] ss:$8 sps:$4 sm:$0xff]   ;;  %v1318_v12 = vld [vmem:[%s1893_s5 + $0x24] ss:$8 sps:$4 sm:$0xff]   ;;  %v1322_v17 = vld [vmem:[%s1893_s5] ss:$8 sps:$4 sm:$0xff]  }
  0x1b   :  { %263 = vmatpush1.bf16.msra.mxu0 %v1222_v13  ;;  %v1316_v13 = vld [vmem:[%s1893_s5 + $0x20] ss:$8 sps:$4 sm:$0xff]   ;;  %v1319_v15 = vld [vmem:[%s1893_s5 + $0x10] ss:$8 sps:$4 sm:$0xff]   ;;  %v1324_v16 = vld [vmem:[%s1893_s5 + $0x4] ss:$8 sps:$4 sm:$0xff]  }
  0x1c   :  { %264 = vmatprep.subr.bf16.mxu0 %v1223_v14  ;;  %v1321_v14 = vld [vmem:[%s1893_s5 + $0x14] ss:$8 sps:$4 sm:$0xff]   ;;  %v1325_v19 = vld [vmem:[%s1893_s5 + $0xf0] ss:$8 sps:$4 sm:$0xff]   ;;  %v1328_v21 = vld [vmem:[%s1893_s5 + $0xe0] ss:$8 sps:$4 sm:$0xff]  }
  0x1d   :  { %514 = vmatpush1.bf16.msra.mxu1 %v1270_v35  ;;  %v1327_v18 = vld [vmem:[%s1893_s5 + $0xf4] ss:$8 sps:$4 sm:$0xff]   ;;  %v1331_v23 = vld [vmem:[%s1893_s5 + $0xd0] ss:$8 sps:$4 sm:$0xff]   ;;  %v1334_v25 = vld [vmem:[%s1893_s5 + $0xc0] ss:$8 sps:$4 sm:$0xff]  }
  0x1e   :  { %515 = vmatprep.subr.bf16.mxu1 %v1271_v37  ;;  %v1337_v27 = vld [vmem:[%s1893_s5 + $0xb0] ss:$8 sps:$4 sm:$0xff]  }
  0x1f   :  { %265 = vmatpush1.bf16.msra.mxu0 %v1225_v20  ;;  %v1330_v20 = vld [vmem:[%s1893_s5 + $0xe4] ss:$8 sps:$4 sm:$0xff]  }
  0x20   :  { %266 = vmatprep.subr.bf16.mxu0 %v1226_v22  ;;  %v1333_v22 = vld [vmem:[%s1893_s5 + $0xd4] ss:$8 sps:$4 sm:$0xff]  }
  0x21   :  { %516 = vmatpush1.bf16.msra.mxu1 %v1273_v39 }
  0x22   :  { %517 = vmatprep.subr.bf16.mxu1 %v1274_v41 }
  0x23   :  { %267 = vmatpush2.bf16.msra.mxu0 %v1228_v24  ;;  %v1336_v24 = vld [vmem:[%s1893_s5 + $0xc4] ss:$8 sps:$4 sm:$0xff]  }
  0x24   :  { %268 = vmatprep.subr.bf16.mxu0 %v1229_v26  ;;  %v1339_v26 = vld [vmem:[%s1893_s5 + $0xb4] ss:$8 sps:$4 sm:$0xff]  }
  0x25   :  { %518 = vmatpush1.bf16.msra.mxu1 %v1276_v43 }
  0x26   :  { %519 = vmatprep.subr.bf16.mxu1 %v1277_v45 }
  0x27   :  { %269 = vmatpush2.bf16.msra.mxu0 %v1231_v28  ;;  %v70_v28 = vlaneseq }
  0x28   :  { %270 = vmatprep.subr.bf16.mxu0 %v1232_v30 }
  0x29   :  { %520 = vmatpush2.bf16.msra.mxu1 %v1279_v47  ;;  %v71_v29 = vshrl.u32 %v70_v28, 7 }
  0x2a   :  { %521 = vmatprep.subr.bf16.mxu1 %v1280_v49  ;;  %v1342_v49 = vld [vmem:[%s1893_s5 + $0xa4] ss:$8 sps:$4 sm:$0xff]  }
  0x2b   :  { %271 = vmatpush2.bf16.msra.mxu0 %v1234_v32  ;;  %v1728_v30 = vsub.s32 1, %v71_v29  ;;  %v1730_v31 = vsub.s32 0, %v71_v29  ;;  %v68_v32 = vld [vmem:[%s1894_s2] sm:$0x3] }
  0x2c   :  { %272 = vmatprep.subr.bf16.mxu0 %v1235_v34 }
  0x2d   :  { %522 = vmatpush2.bf16.msra.mxu1 %v1282_v51  ;;  %v77_v34 = vrot.slane %v68_v32, %v1728_v30  ;;  %v73_v35 = vrot.slane %v68_v32, %v1730_v31  ;;  %v1345_v51 = vld [vmem:[%s1893_s5 + $0x94] ss:$8 sps:$4 sm:$0xff]  }
  0x2e   :  { %523 = vmatprep.subr.bf16.mxu1 %v1283_v53  ;;  %v1348_v53 = vld [vmem:[%s1893_s5 + $0x84] ss:$8 sps:$4 sm:$0xff]  }
  0x2f   :  { %273 = vmatpush2.bf16.msra.mxu0 %v1237_v36 }
  0x30   :  { %274 = vmatprep.subr.bf16.mxu0 %v1238_v38 }
  0x31   :  { %524 = vmatpush2.bf16.msra.mxu1 %v1285_v55  ;;  %v1349_v55 = vld [vmem:[%s1895_s7 + $0x70] ss:$8 sps:$4 sm:$0xff]  }
  0x32   :  { %525 = vmatprep.subr.bf16.mxu1 %v1286_v56  ;;  %v1351_v56 = vld [vmem:[%s1895_s7 + $0x74] ss:$8 sps:$4 sm:$0xff]  }
  0x33   :  { %275 = vmatpush2.bf16.msra.mxu0 %v1240_v40 }
  0x34   :  { %276 = vmatprep.subr.bf16.mxu0 %v1241_v42 }
  0x35   :  { %526 = vmatpush2.bf16.msra.mxu1 %v1288_v57  ;;  %v1354_v57 = vld [vmem:[%s1895_s7 + $0x64] ss:$8 sps:$4 sm:$0xff]  }
  0x36   :  { %527 = vmatprep.subr.bf16.mxu1 %v1289_v58  ;;  %v1352_v58 = vld [vmem:[%s1895_s7 + $0x60] ss:$8 sps:$4 sm:$0xff]  }
  0x37   :  { %277 = vmatpush2.bf16.msra.mxu0 %v1243_v44 }
  0x38   :  { %278 = vmatprep.subr.bf16.mxu0 %v1244_v46 }
  0x39   :  { %528 = vmatpush2.bf16.msra.mxu1 %v1291_v59  ;;  %v1357_v59 = vld [vmem:[%s1895_s7 + $0x54] ss:$8 sps:$4 sm:$0xff]  }
  0x3a   :  { %529 = vmatprep.subr.bf16.mxu1 %v1292_v60  ;;  %v1355_v60 = vld [vmem:[%s1895_s7 + $0x50] ss:$8 sps:$4 sm:$0xff]  }
  0x3b   :  { %279 = vmatpush2.bf16.msra.mxu0 %v1246_v48 }
  0x3c   :  { %280 = vmatprep.subr.bf16.mxu0 %v1247_v50  ;;  %v1340_v50 = vld [vmem:[%s1893_s5 + $0xa0] ss:$8 sps:$4 sm:$0xff]  }
  0x3d   :  { %530 = vmatpush2.bf16.msra.mxu1 %v1294_v61  ;;  %v1360_v61 = vld [vmem:[%s1895_s7 + $0x44] ss:$8 sps:$4 sm:$0xff]  }
  0x3e   :  { %531 = vmatprep.subr.bf16.mxu1 %v1295_v62  ;;  %v1358_v62 = vld [vmem:[%s1895_s7 + $0x40] ss:$8 sps:$4 sm:$0xff]  }
  0x3f   :  { %281 = vmatpush2.bf16.msra.mxu0 %v1249_v52  ;;  %v1343_v52 = vld [vmem:[%s1893_s5 + $0x90] ss:$8 sps:$4 sm:$0xff]  }
  0x40   :  { %760 = vmatprep.subr.bf16.mxu0 %v1303_v3  ;;  %v1369_v3 = vld [vmem:[%s1895_s7 + $0x14] ss:$8 sps:$4 sm:$0xff]  }
  0x41   :  { %532 = vmatpush2.bf16.msra.mxu1 %v1297_v63  ;;  %v1363_v63 = vld [vmem:[%s1895_s7 + $0x34] ss:$8 sps:$4 sm:$0xff]  }
  0x42   :  { %283 = vmatmul.mubr.bf16.vlgmr.msra.gmra.mxu0 %v1250_v54  ;;  %533 = vmatprep.subr.bf16.mxu1 %v1298_v0  ;;  %v1346_v54 = vld [vmem:[%s1893_s5 + $0x80] ss:$8 sps:$4 sm:$0xff]   ;;  %v1361_v0 = vld [vmem:[%s1895_s7 + $0x30] ss:$8 sps:$4 sm:$0xff]  }
  0x43   :  { %761 = vmatpush1.bf16.msra.mxu0 %v1301_v2  ;;  %v1364_v2 = vld [vmem:[%s1895_s7 + $0x20] ss:$8 sps:$4 sm:$0xff]  }
  0x44   :  { %762 = vmatprep.subr.bf16.mxu0 %v1306_v4  ;;  %v1367_v4 = vld [vmem:[%s1895_s7 + $0x10] ss:$8 sps:$4 sm:$0xff]  }
  0x45   :  { %534 = vmatpush2.bf16.msra.mxu1 %v1300_v1  ;;  %v1366_v1 = vld [vmem:[%s1895_s7 + $0x24] ss:$8 sps:$4 sm:$0xff]  }
  0x46   :  { %1013 = vmatprep.subr.bf16.mxu1 %v1351_v56 }
  0x47   :  { %763 = vmatpush1.bf16.msra.mxu0 %v1304_v5  ;;  %v1372_v5 = vld [vmem:[%s1895_s7 + $0x4] ss:$8 sps:$4 sm:$0xff]  }
  0x48   :  { %764 = vmatprep.subr.bf16.mxu0 %v1309_v6  ;;  %v1370_v6 = vld [vmem:[%s1895_s7] ss:$8 sps:$4 sm:$0xff]  }
  0x4b   :  { %765 = vmatpush1.bf16.msra.mxu0 %v1307_v7  ;;  %v1375_v7 = vld [vmem:[%s1895_s7 + $0xf4] ss:$8 sps:$4 sm:$0xff]  }
  0x4c   :  { %766 = vmatprep.subr.bf16.mxu0 %v1312_v8  ;;  %v1373_v8 = vld [vmem:[%s1895_s7 + $0xf0] ss:$8 sps:$4 sm:$0xff]  }
  0x4f   :  { %767 = vmatpush1.bf16.msra.mxu0 %v1310_v9  ;;  %v1378_v9 = vld [vmem:[%s1895_s7 + $0xe4] ss:$8 sps:$4 sm:$0xff]  }
  0x50   :  { %768 = vmatprep.subr.bf16.mxu0 %v1315_v10  ;;  %v1376_v10 = vld [vmem:[%s1895_s7 + $0xe0] ss:$8 sps:$4 sm:$0xff]  }
  0x53   :  { %769 = vmatpush1.bf16.msra.mxu0 %v1313_v11  ;;  %v1381_v11 = vld [vmem:[%s1895_s7 + $0xd4] ss:$8 sps:$4 sm:$0xff]  }
  0x54   :  { %770 = vmatprep.subr.bf16.mxu0 %v1318_v12  ;;  %v1379_v12 = vld [vmem:[%s1895_s7 + $0xd0] ss:$8 sps:$4 sm:$0xff]  }
  0x57   :  { %771 = vmatpush1.bf16.msra.mxu0 %v1316_v13  ;;  %v1384_v13 = vld [vmem:[%s1895_s7 + $0xc4] ss:$8 sps:$4 sm:$0xff]  }
  0x58   :  { %772 = vmatprep.subr.bf16.mxu0 %v1321_v14  ;;  %v1382_v14 = vld [vmem:[%s1895_s7 + $0xc0] ss:$8 sps:$4 sm:$0xff]  }
  0x5b   :  { %773 = vmatpush1.bf16.msra.mxu0 %v1319_v15  ;;  %v1387_v15 = vld [vmem:[%s1895_s7 + $0xb4] ss:$8 sps:$4 sm:$0xff]  }
  0x5c   :  { %774 = vmatprep.subr.bf16.mxu0 %v1324_v16  ;;  %v1385_v16 = vld [vmem:[%s1895_s7 + $0xb0] ss:$8 sps:$4 sm:$0xff]  }
  0x5f   :  { %775 = vmatpush1.bf16.msra.mxu0 %v1322_v17  ;;  %v331_v17 = vld [vmem:[%s1896_s4] sm:$0x3] }
  0x60   :  { %776 = vmatprep.subr.bf16.mxu0 %v1327_v18  ;;  %v336_v18 = vrot.slane %v331_v17, %v1730_v31 }
  0x63   :  { %777 = vmatpush2.bf16.msra.mxu0 %v1325_v19  ;;  %v340_v19 = vrot.slane %v331_v17, %v1728_v30 }
  0x64   :  { %778 = vmatprep.subr.bf16.mxu0 %v1330_v20 }
  0x67   :  { %779 = vmatpush2.bf16.msra.mxu0 %v1328_v21 }
  0x68   :  { %780 = vmatprep.subr.bf16.mxu0 %v1333_v22 }
  0x6b   :  { %781 = vmatpush2.bf16.msra.mxu0 %v1331_v23 }
  0x6c   :  { %782 = vmatprep.subr.bf16.mxu0 %v1336_v24 }
  0x6f   :  { %783 = vmatpush2.bf16.msra.mxu0 %v1334_v25 }
  0x70   :  { %784 = vmatprep.subr.bf16.mxu0 %v1339_v26 }
  0x73   :  { %785 = vmatpush2.bf16.msra.mxu0 %v1337_v27 }
  0x74   :  { %786 = vmatprep.subr.bf16.mxu0 %v1342_v49 }
  0x77   :  { %787 = vmatpush2.bf16.msra.mxu0 %v1340_v50 }
  0x78   :  { %788 = vmatprep.subr.bf16.mxu0 %v1345_v51 }
  0x7b   :  { %789 = vmatpush2.bf16.msra.mxu0 %v1343_v52 }
  0x7c   :  { %790 = vmatprep.subr.bf16.mxu0 %v1348_v53 }
  0x7f   :  { %791 = vmatpush2.bf16.msra.mxu0 %v1346_v54 }
 0x102   :  { %v284_v33 = vpop.f32.mrf.mxu0 }
 0x103   :  { %v285_v40 = vadd.f32 %v284_v33, %v73_v35 }
 0x104   :  { %v286_v36 = vpop.f32.mrf.mxu0 }
 0x105   :  { %v287_v38 = vadd.f32 %v286_v36, %v77_v34  ;;  %v293_v46 = vmax.f32 %v285_v40, 0.0  ;;  %v1390_v36 = vld [vmem:[%s1895_s7 + $0xa4] ss:$8 sps:$4 sm:$0xff]  }
 0x106   :  { %v288_v37 = vpop.f32.mrf.mxu0  ;;  %v1396_v40 = vld [vmem:[%s1895_s7 + $0x84] ss:$8 sps:$4 sm:$0xff]  }
 0x107   :  { %v289_v39 = vadd.f32 %v288_v37, %v73_v35  ;;  %v294_v44 = vmax.f32 %v287_v38, 0.0  ;;  %v1388_v37 = vld [vmem:[%s1895_s7 + $0xa0] ss:$8 sps:$4 sm:$0xff]   ;;  %v1393_v38 = vld [vmem:[%s1895_s7 + $0x94] ss:$8 sps:$4 sm:$0xff]  }
 0x108   :  { %v290_v41 = vpop.f32.mrf.mxu0 }
 0x109   :  { %v291_v42 = vadd.f32 %v290_v41, %v77_v34  ;;  %v295_v43 = vmax.f32 %v289_v39, 0.0  ;;  %v1391_v39 = vld [vmem:[%s1895_s7 + $0x90] ss:$8 sps:$4 sm:$0xff]   ;;  %v1394_v41 = vld [vmem:[%s1895_s7 + $0x80] ss:$8 sps:$4 sm:$0xff]  }
 0x10b   :  { %v296_v45 = vmax.f32 %v291_v42, 0.0  ;;  %v297_v48 = vpack.c.bf16 %v295_v43, %v293_v46  ;;  %v588_v42 = vld [vmem:[%s1898_s6] sm:$0x3] }
 0x10d   :  { %v298_v47 = vpack.c.bf16 %v296_v45, %v294_v44  ;;  %v597_v44 = vrot.slane %v588_v42, %v1728_v30  ;;  %v593_v45 = vrot.slane %v588_v42, %v1730_v31 }
 0x10f   :  { %535 = vmatprep.mubr.bf16.mxu1 %v298_v47 }
 0x110   :  { %536 = vmatmul.mubr.bf16.vlgmr.msra.gmra.mxu1 %v297_v48 }
 0x111   :  { %1014 = vmatpush1.bf16.msra.mxu1 %v1349_v55 }
 0x112   :  { %1015 = vmatprep.subr.bf16.mxu1 %v1354_v57 }
 0x115   :  { %1016 = vmatpush1.bf16.msra.mxu1 %v1352_v58 }
 0x116   :  { %1017 = vmatprep.subr.bf16.mxu1 %v1357_v59  ;;  %v841_v59 = vld [vmem:[%s1899_s8] sm:$0x3] }
 0x119   :  { %1018 = vmatpush1.bf16.msra.mxu1 %v1355_v60  ;;  %v846_v60 = vrot.slane %v841_v59, %v1730_v31 }
 0x11a   :  { %1019 = vmatprep.subr.bf16.mxu1 %v1360_v61  ;;  %v850_v61 = vrot.slane %v841_v59, %v1728_v30 }
 0x11d   :  { %1020 = vmatpush1.bf16.msra.mxu1 %v1358_v62 }
 0x11e   :  { %1021 = vmatprep.subr.bf16.mxu1 %v1363_v63 }
 0x121   :  { %1022 = vmatpush1.bf16.msra.mxu1 %v1361_v0 }
 0x122   :  { %1023 = vmatprep.subr.bf16.mxu1 %v1366_v1 }
 0x125   :  { %1024 = vmatpush1.bf16.msra.mxu1 %v1364_v2 }
 0x126   :  { %1025 = vmatprep.subr.bf16.mxu1 %v1369_v3 }
 0x129   :  { %1026 = vmatpush1.bf16.msra.mxu1 %v1367_v4 }
 0x12a   :  { %1027 = vmatprep.subr.bf16.mxu1 %v1372_v5 }
 0x12d   :  { %1028 = vmatpush1.bf16.msra.mxu1 %v1370_v6 }
 0x12e   :  { %1029 = vmatprep.subr.bf16.mxu1 %v1375_v7 }
 0x131   :  { %1030 = vmatpush2.bf16.msra.mxu1 %v1373_v8 }
 0x132   :  { %1031 = vmatprep.subr.bf16.mxu1 %v1378_v9 }
 0x135   :  { %1032 = vmatpush2.bf16.msra.mxu1 %v1376_v10 }
 0x136   :  { %1033 = vmatprep.subr.bf16.mxu1 %v1381_v11 }
 0x139   :  { %1034 = vmatpush2.bf16.msra.mxu1 %v1379_v12 }
 0x13a   :  { %1035 = vmatprep.subr.bf16.mxu1 %v1384_v13 }
 0x13d   :  { %1036 = vmatpush2.bf16.msra.mxu1 %v1382_v14 }
 0x13e   :  { %1037 = vmatprep.subr.bf16.mxu1 %v1387_v15 }
 0x141   :  { %1038 = vmatpush2.bf16.msra.mxu1 %v1385_v16 }
 0x142   :  { %1039 = vmatprep.subr.bf16.mxu1 %v1390_v36 }
 0x145   :  { %1040 = vmatpush2.bf16.msra.mxu1 %v1388_v37 }
 0x146   :  { %1041 = vmatprep.subr.bf16.mxu1 %v1393_v38 }
 0x149   :  { %1042 = vmatpush2.bf16.msra.mxu1 %v1391_v39 }
 0x14a   :  { %1043 = vmatprep.subr.bf16.mxu1 %v1396_v40 }
 0x14d   :  { %1044 = vmatpush2.bf16.msra.mxu1 %v1394_v41 }
 0x1d0   :  { %v537_v20 = vpop.f32.mrf.mxu1 }
 0x1d1   :  { %v538_v21 = vadd.f32 %v537_v20, %v336_v18 }
 0x1d2   :  { %v539_v22 = vpop.f32.mrf.mxu1 }
 0x1d3   :  { %v546_v23 = vmax.f32 %v538_v21, 0.0  ;;  %v540_v24 = vadd.f32 %v539_v22, %v340_v19 }
 0x1d4   :  { %v541_v25 = vpop.f32.mrf.mxu1 }
 0x1d5   :  { %550 = vst [vmem:[%s1897_s9] sm:$0xff] %v546_v23  ;;  %v547_v26 = vmax.f32 %v540_v24, 0.0  ;;  %v542_v27 = vadd.f32 %v541_v25, %v336_v18 }
 0x1d6   :  { %v543_v28 = vpop.f32.mrf.mxu1 }
 0x1d7   :  { %551 = vst [vmem:[%s1897_s9 + $0x8] sm:$0xff] %v547_v26  ;;  %v548_v29 = vmax.f32 %v542_v27, 0.0  ;;  %v544_v32 = vadd.f32 %v543_v28, %v340_v19 }
 0x1d9   :  { %552 = vst [vmem:[%s1897_s9 + $0x10] sm:$0xff] %v548_v29  ;;  %v549_v33 = vmax.f32 %v544_v32, 0.0  ;;  %v554_v35 = vpack.c.bf16 %v548_v29, %v546_v23 }
 0x1db   :  { %553 = vst [vmem:[%s1897_s9 + $0x18] sm:$0xff] %v549_v33  ;;  %v555_v34 = vpack.c.bf16 %v549_v33, %v547_v26 }
 0x1dd   :  { %792 = vmatprep.mubr.bf16.mxu0 %v555_v34 }
 0x1de   :  { %793 = vmatmul.mubr.bf16.vlgmr.msra.gmra.mxu0 %v554_v35 }
 0x29e   :  { %v794_v43 = vpop.f32.mrf.mxu0 }
 0x29f   :  { %v795_v50 = vadd.f32 %v794_v43, %v593_v45 }
 0x2a0   :  { %v796_v46 = vpop.f32.mrf.mxu0 }
 0x2a1   :  { %v797_v48 = vadd.f32 %v796_v46, %v597_v44  ;;  %v803_v56 = vmax.f32 %v795_v50, 0.0 }
 0x2a2   :  { %v798_v47 = vpop.f32.mrf.mxu0 }
 0x2a3   :  { %v799_v49 = vadd.f32 %v798_v47, %v593_v45  ;;  %v804_v54 = vmax.f32 %v797_v48, 0.0 }
 0x2a4   :  { %v800_v51 = vpop.f32.mrf.mxu0 }
 0x2a5   :  { %v801_v52 = vadd.f32 %v800_v51, %v597_v44  ;;  %v805_v53 = vmax.f32 %v799_v49, 0.0 }
 0x2a7   :  { %v806_v55 = vmax.f32 %v801_v52, 0.0  ;;  %v807_v58 = vpack.c.bf16 %v805_v53, %v803_v56 }
 0x2a9   :  { %v808_v57 = vpack.c.bf16 %v806_v55, %v804_v54 }
 0x2ab   :  { %1045 = vmatprep.mubr.bf16.mxu1 %v808_v57 }
 0x2ac   :  { %1046 = vmatmul.mubr.bf16.vlgmr.msra.gmra.mxu1 %v807_v58 }
 0x36c   :  { %v1047_v62 = vpop.f32.mrf.mxu1 }
 0x36d   :  { %v1048_v63 = vadd.f32 %v1047_v62, %v846_v60 }
 0x36e   :  { %v1049_v0 = vpop.f32.mrf.mxu1 }
 0x36f   :  { %v1056_v1 = vmax.f32 %v1048_v63, 0.0  ;;  %v1050_v2 = vadd.f32 %v1049_v0, %v850_v61 }
 0x370   :  { %v1051_v3 = vpop.f32.mrf.mxu1 }
 0x371   :  { %1060 = vst [vmem:[%s1900_s10] sm:$0xff] %v1056_v1  ;;  %v1057_v4 = vmax.f32 %v1050_v2, 0.0  ;;  %v1052_v5 = vadd.f32 %v1051_v3, %v846_v60 }
 0x372   :  { %v1053_v6 = vpop.f32.mrf.mxu1 }
 0x373   :  { %1061 = vst [vmem:[%s1900_s10 + $0x8] sm:$0xff] %v1057_v4  ;;  %v1058_v31 = vmax.f32 %v1052_v5, 0.0  ;;  %v1054_v7 = vadd.f32 %v1053_v6, %v850_v61 }
 0x375   :  { %1062 = vst [vmem:[%s1900_s10 + $0x10] sm:$0xff] %v1058_v31  ;;  %v1059_v30 = vmax.f32 %v1054_v7, 0.0 }
 0x377   :  { %1063 = vst [vmem:[%s1900_s10 + $0x18] sm:$0xff] %v1059_v30 }

// kernel: _cvp_impl.1
= control target key start
LH: loop header
LB: loop body
LE: loop exit
PB: predicated region body
PF: predicated region fallthrough
CT: control target
= control target key end

     0   :  { %s1890_s1 = inlined_call_operand.vmem [shape: bf16[256,256], index: 1, kind: input, shape index: {}]   ;;  %s1891_s0 = inlined_call_operand.vmem [shape: bf16[16,256], index: 0, kind: input, shape index: {}]   ;;  %s1892_s3 = inlined_call_operand.vmem [shape: bf16[256,256], index: 3, kind: input, shape index: {}]   ;;  %s1893_s5 = inlined_call_operand.vmem [shape: bf16[256,256], index: 5, kind: input, shape index: {}]   ;;  %s1894_s2 = inlined_call_operand.vmem [shape: f32[1,256], index: 2, kind: input, shape index: {}]   ;;  %s1895_s7 = inlined_call_operand.vmem [shape: bf16[256,256], index: 7, kind: input, shape index: {}]   ;;  %s1896_s4 = inlined_call_operand.vmem [shape: f32[1,256], index: 4, kind: input, shape index: {}]   ;;  %s1897_s9 = inlined_call_operand.vmem [shape: f32[16,256], index: 9, kind: output, shape index: {0}]   ;;  %s1898_s6 = inlined_call_operand.vmem [shape: f32[1,256], index: 6, kind: input, shape index: {}]   ;;  %s1899_s8 = inlined_call_operand.vmem [shape: f32[1,256], index: 8, kind: input, shape index: {}]   ;;  %s1900_s10 = inlined_call_operand.vmem [shape: f32[16,256], index: 10, kind: output, shape index: {1}]  }
   0x1   :  { %v1202_v0 = vld [vmem:[%s1890_s1 + $0x74] ss:$8 sps:$4 sm:$0xff]   ;;  %v1204_v1 = vld [vmem:[%s1890_s1 + $0x70] ss:$8 sps:$4 sm:$0xff]   ;;  %v1205_v2 = vld [vmem:[%s1890_s1 + $0x64] ss:$8 sps:$4 sm:$0xff]  }
   0x2   :  { %250 = vmatprep.subr.bf16.mxu0 %v1202_v0  ;;  %v1207_v3 = vld [vmem:[%s1890_s1 + $0x60] ss:$8 sps:$4 sm:$0xff]   ;;  %v1208_v4 = vld [vmem:[%s1890_s1 + $0x54] ss:$8 sps:$4 sm:$0xff]   ;;  %v1210_v5 = vld [vmem:[%s1890_s1 + $0x50] ss:$8 sps:$4 sm:$0xff]  }
   0x3   :  { %251 = vmatpush1.bf16.msra.mxu0 %v1204_v1  ;;  %v1211_v6 = vld [vmem:[%s1890_s1 + $0x44] ss:$8 sps:$4 sm:$0xff]   ;;  %v1213_v7 = vld [vmem:[%s1890_s1 + $0x40] ss:$8 sps:$4 sm:$0xff]   ;;  %v1214_v8 = vld [vmem:[%s1890_s1 + $0x34] ss:$8 sps:$4 sm:$0xff]  }
   0x4   :  { %252 = vmatprep.subr.bf16.mxu0 %v1205_v2  ;;  %v1216_v9 = vld [vmem:[%s1890_s1 + $0x30] ss:$8 sps:$4 sm:$0xff]   ;;  %v1217_v10 = vld [vmem:[%s1890_s1 + $0x24] ss:$8 sps:$4 sm:$0xff]   ;;  %v1219_v11 = vld [vmem:[%s1890_s1 + $0x20] ss:$8 sps:$4 sm:$0xff]  }
   0x5   :  { %v1220_v12 = vld [vmem:[%s1890_s1 + $0x14] ss:$8 sps:$4 sm:$0xff]   ;;  %v1222_v13 = vld [vmem:[%s1890_s1 + $0x10] ss:$8 sps:$4 sm:$0xff]   ;;  %v1223_v14 = vld [vmem:[%s1890_s1 + $0x4] ss:$8 sps:$4 sm:$0xff]  }
   0x6   :  { %v1252_v15 = vld [vmem:[%s1891_s0 + $0x4] ss:$8 sps:$4 sm:$0xff]   ;;  %v1253_v16 = vld [vmem:[%s1892_s3 + $0x74] ss:$8 sps:$4 sm:$0xff]   ;;  %v1255_v17 = vld [vmem:[%s1892_s3 + $0x70] ss:$8 sps:$4 sm:$0xff]  }
   0x7   :  { %253 = vmatpush1.bf16.msra.mxu0 %v1207_v3  ;;  %282 = vmatprep.mubr.bf16.mxu0 %v1252_v15  ;;  %v1256_v18 = vld [vmem:[%s1892_s3 + $0x64] ss:$8 sps:$4 sm:$0xff]   ;;  %v1258_v19 = vld [vmem:[%s1892_s3 + $0x60] ss:$8 sps:$4 sm:$0xff]   ;;  %v1259_v21 = vld [vmem:[%s1892_s3 + $0x54] ss:$8 sps:$4 sm:$0xff]  }
   0x8   :  { %254 = vmatprep.subr.bf16.mxu0 %v1208_v4  ;;  %503 = vmatprep.subr.bf16.mxu1 %v1253_v16  ;;  %v1225_v20 = vld [vmem:[%s1890_s1] ss:$8 sps:$4 sm:$0xff]   ;;  %v1226_v22 = vld [vmem:[%s1890_s1 + $0xf4] ss:$8 sps:$4 sm:$0xff]   ;;  %v1261_v23 = vld [vmem:[%s1892_s3 + $0x50] ss:$8 sps:$4 sm:$0xff]  }
   0x9   :  { %504 = vmatpush1.bf16.msra.mxu1 %v1255_v17  ;;  %v1228_v24 = vld [vmem:[%s1890_s1 + $0xf0] ss:$8 sps:$4 sm:$0xff]   ;;  %v1262_v25 = vld [vmem:[%s1892_s3 + $0x44] ss:$8 sps:$4 sm:$0xff]   ;;  %v1264_v27 = vld [vmem:[%s1892_s3 + $0x40] ss:$8 sps:$4 sm:$0xff]  }
   0xa   :  { %505 = vmatprep.subr.bf16.mxu1 %v1256_v18  ;;  %v1229_v26 = vld [vmem:[%s1890_s1 + $0xe4] ss:$8 sps:$4 sm:$0xff]   ;;  %v1231_v28 = vld [vmem:[%s1890_s1 + $0xe0] ss:$8 sps:$4 sm:$0xff]   ;;  %v1265_v29 = vld [vmem:[%s1892_s3 + $0x34] ss:$8 sps:$4 sm:$0xff]  }
   0xb   :  { %255 = vmatpush1.bf16.msra.mxu0 %v1210_v5  ;;  %v1232_v30 = vld [vmem:[%s1890_s1 + $0xd4] ss:$8 sps:$4 sm:$0xff]   ;;  %v1267_v31 = vld [vmem:[%s1892_s3 + $0x30] ss:$8 sps:$4 sm:$0xff]   ;;  %v1268_v33 = vld [vmem:[%s1892_s3 + $0x24] ss:$8 sps:$4 sm:$0xff]  }
   0xc   :  { %256 = vmatprep.subr.bf16.mxu0 %v1211_v6  ;;  %v1234_v32 = vld [vmem:[%s1890_s1 + $0xd0] ss:$8 sps:$4 sm:$0xff]   ;;  %v1235_v34 = vld [vmem:[%s1890_s1 + $0xc4] ss:$8 sps:$4 sm:$0xff]   ;;  %v1270_v35 = vld [vmem:[%s1892_s3 + $0x20] ss:$8 sps:$4 sm:$0xff]  }
   0xd   :  { %506 = vmatpush1.bf16.msra.mxu1 %v1258_v19  ;;  %v1237_v36 = vld [vmem:[%s1890_s1 + $0xc0] ss:$8 sps:$4 sm:$0xff]   ;;  %v1271_v37 = vld [vmem:[%s1892_s3 + $0x14] ss:$8 sps:$4 sm:$0xff]   ;;  %v1273_v39 = vld [vmem:[%s1892_s3 + $0x10] ss:$8 sps:$4 sm:$0xff]  }
   0xe   :  { %507 = vmatprep.subr.bf16.mxu1 %v1259_v21  ;;  %v1238_v38 = vld [vmem:[%s1890_s1 + $0xb4] ss:$8 sps:$4 sm:$0xff]   ;;  %v1240_v40 = vld [vmem:[%s1890_s1 + $0xb0] ss:$8 sps:$4 sm:$0xff]   ;;  %v1274_v41 = vld [vmem:[%s1892_s3 + $0x4] ss:$8 sps:$4 sm:$0xff]  }
   0xf   :  { %257 = vmatpush1.bf16.msra.mxu0 %v1213_v7  ;;  %v1241_v42 = vld [vmem:[%s1890_s1 + $0xa4] ss:$8 sps:$4 sm:$0xff]   ;;  %v1276_v43 = vld [vmem:[%s1892_s3] ss:$8 sps:$4 sm:$0xff]   ;;  %v1277_v45 = vld [vmem:[%s1892_s3 + $0xf4] ss:$8 sps:$4 sm:$0xff]  }
  0x10   :  { %258 = vmatprep.subr.bf16.mxu0 %v1214_v8  ;;  %v1243_v44 = vld [vmem:[%s1890_s1 + $0xa0] ss:$8 sps:$4 sm:$0xff]   ;;  %v1244_v46 = vld [vmem:[%s1890_s1 + $0x94] ss:$8 sps:$4 sm:$0xff]   ;;  %v1279_v47 = vld [vmem:[%s1892_s3 + $0xf0] ss:$8 sps:$4 sm:$0xff]  }
  0x11   :  { %508 = vmatpush1.bf16.msra.mxu1 %v1261_v23  ;;  %v1246_v48 = vld [vmem:[%s1890_s1 + $0x90] ss:$8 sps:$4 sm:$0xff]   ;;  %v1280_v49 = vld [vmem:[%s1892_s3 + $0xe4] ss:$8 sps:$4 sm:$0xff]   ;;  %v1282_v51 = vld [vmem:[%s1892_s3 + $0xe0] ss:$8 sps:$4 sm:$0xff]  }
  0x12   :  { %509 = vmatprep.subr.bf16.mxu1 %v1262_v25  ;;  %v1247_v50 = vld [vmem:[%s1890_s1 + $0x84] ss:$8 sps:$4 sm:$0xff]   ;;  %v1249_v52 = vld [vmem:[%s1890_s1 + $0x80] ss:$8 sps:$4 sm:$0xff]   ;;  %v1283_v53 = vld [vmem:[%s1892_s3 + $0xd4] ss:$8 sps:$4 sm:$0xff]  }
  0x13   :  { %259 = vmatpush1.bf16.msra.mxu0 %v1216_v9  ;;  %v1250_v54 = vld [vmem:[%s1891_s0] ss:$8 sps:$4 sm:$0xff]   ;;  %v1285_v55 = vld [vmem:[%s1892_s3 + $0xd0] ss:$8 sps:$4 sm:$0xff]   ;;  %v1286_v56 = vld [vmem:[%s1892_s3 + $0xc4] ss:$8 sps:$4 sm:$0xff]  }
  0x14   :  { %260 = vmatprep.subr.bf16.mxu0 %v1217_v10  ;;  %v1288_v57 = vld [vmem:[%s1892_s3 + $0xc0] ss:$8 sps:$4 sm:$0xff]   ;;  %v1289_v58 = vld [vmem:[%s1892_s3 + $0xb4] ss:$8 sps:$4 sm:$0xff]   ;;  %v1291_v59 = vld [vmem:[%s1892_s3 + $0xb0] ss:$8 sps:$4 sm:$0xff]  }
  0x15   :  { %510 = vmatpush1.bf16.msra.mxu1 %v1264_v27  ;;  %v1292_v60 = vld [vmem:[%s1892_s3 + $0xa4] ss:$8 sps:$4 sm:$0xff]   ;;  %v1294_v61 = vld [vmem:[%s1892_s3 + $0xa0] ss:$8 sps:$4 sm:$0xff]   ;;  %v1295_v62 = vld [vmem:[%s1892_s3 + $0x94] ss:$8 sps:$4 sm:$0xff]  }
  0x16   :  { %511 = vmatprep.subr.bf16.mxu1 %v1265_v29  ;;  %v1297_v63 = vld [vmem:[%s1892_s3 + $0x90] ss:$8 sps:$4 sm:$0xff]   ;;  %v1298_v0 = vld [vmem:[%s1892_s3 + $0x84] ss:$8 sps:$4 sm:$0xff]   ;;  %v1300_v1 = vld [vmem:[%s1892_s3 + $0x80] ss:$8 sps:$4 sm:$0xff]  }
  0x17   :  { %261 = vmatpush1.bf16.msra.mxu0 %v1219_v11  ;;  %v1301_v2 = vld [vmem:[%s1893_s5 + $0x70] ss:$8 sps:$4 sm:$0xff]   ;;  %v1303_v3 = vld [vmem:[%s1893_s5 + $0x74] ss:$8 sps:$4 sm:$0xff]   ;;  %v1306_v4 = vld [vmem:[%s1893_s5 + $0x64] ss:$8 sps:$4 sm:$0xff]  }
  0x18   :  { %262 = vmatprep.subr.bf16.mxu0 %v1220_v12  ;;  %v1304_v5 = vld [vmem:[%s1893_s5 + $0x60] ss:$8 sps:$4 sm:$0xff]   ;;  %v1309_v6 = vld [vmem:[%s1893_s5 + $0x54] ss:$8 sps:$4 sm:$0xff]   ;;  %v1307_v7 = vld [vmem:[%s1893_s5 + $0x50] ss:$8 sps:$4 sm:$0xff]  }
  0x19   :  { %512 = vmatpush1.bf16.msra.mxu1 %v1267_v31  ;;  %v1312_v8 = vld [vmem:[%s1893_s5 + $0x44] ss:$8 sps:$4 sm:$0xff]   ;;  %v1310_v9 = vld [vmem:[%s1893_s5 + $0x40] ss:$8 sps:$4 sm:$0xff]   ;;  %v1315_v10 = vld [vmem:[%s1893_s5 + $0x34] ss:$8 sps:$4 sm:$0xff]  }
  0x1a   :  { %513 = vmatprep.subr.bf16.mxu1 %v1268_v33  ;;  %v1313_v11 = vld [vmem:[%s1893_s5 + $0x30] ss:$8 sps:$4 sm:$0xff]   ;;  %v1318_v12 = vld [vmem:[%s1893_s5 + $0x24] ss:$8 sps:$4 sm:$0xff]   ;;  %v1322_v17 = vld [vmem:[%s1893_s5] ss:$8 sps:$4 sm:$0xff]  }
  0x1b   :  { %263 = vmatpush1.bf16.msra.mxu0 %v1222_v13  ;;  %v1316_v13 = vld [vmem:[%s1893_s5 + $0x20] ss:$8 sps:$4 sm:$0xff]   ;;  %v1319_v15 = vld [vmem:[%s1893_s5 + $0x10] ss:$8 sps:$4 sm:$0xff]   ;;  %v1324_v16 = vld [vmem:[%s1893_s5 + $0x4] ss:$8 sps:$4 sm:$0xff]  }
  0x1c   :  { %264 = vmatprep.subr.bf16.mxu0 %v1223_v14  ;;  %v1321_v14 = vld [vmem:[%s1893_s5 + $0x14] ss:$8 sps:$4 sm:$0xff]   ;;  %v1325_v19 = vld [vmem:[%s1893_s5 + $0xf0] ss:$8 sps:$4 sm:$0xff]   ;;  %v1328_v21 = vld [vmem:[%s1893_s5 + $0xe0] ss:$8 sps:$4 sm:$0xff]  }
  0x1d   :  { %514 = vmatpush1.bf16.msra.mxu1 %v1270_v35  ;;  %v1327_v18 = vld [vmem:[%s1893_s5 + $0xf4] ss:$8 sps:$4 sm:$0xff]   ;;  %v1331_v23 = vld [vmem:[%s1893_s5 + $0xd0] ss:$8 sps:$4 sm:$0xff]   ;;  %v1334_v25 = vld [vmem:[%s1893_s5 + $0xc0] ss:$8 sps:$4 sm:$0xff]  }
  0x1e   :  { %515 = vmatprep.subr.bf16.mxu1 %v1271_v37  ;;  %v1337_v27 = vld [vmem:[%s1893_s5 + $0xb0] ss:$8 sps:$4 sm:$0xff]  }
  0x1f   :  { %265 = vmatpush1.bf16.msra.mxu0 %v1225_v20  ;;  %v1330_v20 = vld [vmem:[%s1893_s5 + $0xe4] ss:$8 sps:$4 sm:$0xff]  }
  0x20   :  { %266 = vmatprep.subr.bf16.mxu0 %v1226_v22  ;;  %v1333_v22 = vld [vmem:[%s1893_s5 + $0xd4] ss:$8 sps:$4 sm:$0xff]  }
  0x21   :  { %516 = vmatpush1.bf16.msra.mxu1 %v1273_v39 }
  0x22   :  { %517 = vmatprep.subr.bf16.mxu1 %v1274_v41 }
  0x23   :  { %267 = vmatpush2.bf16.msra.mxu0 %v1228_v24  ;;  %v1336_v24 = vld [vmem:[%s1893_s5 + $0xc4] ss:$8 sps:$4 sm:$0xff]  }
  0x24   :  { %268 = vmatprep.subr.bf16.mxu0 %v1229_v26  ;;  %v1339_v26 = vld [vmem:[%s1893_s5 + $0xb4] ss:$8 sps:$4 sm:$0xff]  }
  0x25   :  { %518 = vmatpush1.bf16.msra.mxu1 %v1276_v43 }
  0x26   :  { %519 = vmatprep.subr.bf16.mxu1 %v1277_v45 }
  0x27   :  { %269 = vmatpush2.bf16.msra.mxu0 %v1231_v28  ;;  %v70_v28 = vlaneseq }
  0x28   :  { %270 = vmatprep.subr.bf16.mxu0 %v1232_v30 }
  0x29   :  { %520 = vmatpush2.bf16.msra.mxu1 %v1279_v47  ;;  %v71_v29 = vshrl.u32 %v70_v28, 7 }
  0x2a   :  { %521 = vmatprep.subr.bf16.mxu1 %v1280_v49  ;;  %v1342_v49 = vld [vmem:[%s1893_s5 + $0xa4] ss:$8 sps:$4 sm:$0xff]  }
  0x2b   :  { %271 = vmatpush2.bf16.msra.mxu0 %v1234_v32  ;;  %v1728_v30 = vsub.s32 1, %v71_v29  ;;  %v1730_v31 = vsub.s32 0, %v71_v29  ;;  %v68_v32 = vld [vmem:[%s1894_s2] sm:$0x3] }
  0x2c   :  { %272 = vmatprep.subr.bf16.mxu0 %v1235_v34 }
  0x2d   :  { %522 = vmatpush2.bf16.msra.mxu1 %v1282_v51  ;;  %v77_v34 = vrot.slane %v68_v32, %v1728_v30  ;;  %v73_v35 = vrot.slane %v68_v32, %v1730_v31  ;;  %v1345_v51 = vld [vmem:[%s1893_s5 + $0x94] ss:$8 sps:$4 sm:$0xff]  }
  0x2e   :  { %523 = vmatprep.subr.bf16.mxu1 %v1283_v53  ;;  %v1348_v53 = vld [vmem:[%s1893_s5 + $0x84] ss:$8 sps:$4 sm:$0xff]  }
  0x2f   :  { %273 = vmatpush2.bf16.msra.mxu0 %v1237_v36 }
  0x30   :  { %274 = vmatprep.subr.bf16.mxu0 %v1238_v38 }
  0x31   :  { %524 = vmatpush2.bf16.msra.mxu1 %v1285_v55  ;;  %v1349_v55 = vld [vmem:[%s1895_s7 + $0x70] ss:$8 sps:$4 sm:$0xff]  }
  0x32   :  { %525 = vmatprep.subr.bf16.mxu1 %v1286_v56  ;;  %v1351_v56 = vld [vmem:[%s1895_s7 + $0x74] ss:$8 sps:$4 sm:$0xff]  }
  0x33   :  { %275 = vmatpush2.bf16.msra.mxu0 %v1240_v40 }
  0x34   :  { %276 = vmatprep.subr.bf16.mxu0 %v1241_v42 }
  0x35   :  { %526 = vmatpush2.bf16.msra.mxu1 %v1288_v57  ;;  %v1354_v57 = vld [vmem:[%s1895_s7 + $0x64] ss:$8 sps:$4 sm:$0xff]  }
  0x36   :  { %527 = vmatprep.subr.bf16.mxu1 %v1289_v58  ;;  %v1352_v58 = vld [vmem:[%s1895_s7 + $0x60] ss:$8 sps:$4 sm:$0xff]  }
  0x37   :  { %277 = vmatpush2.bf16.msra.mxu0 %v1243_v44 }
  0x38   :  { %278 = vmatprep.subr.bf16.mxu0 %v1244_v46 }
  0x39   :  { %528 = vmatpush2.bf16.msra.mxu1 %v1291_v59  ;;  %v1357_v59 = vld [vmem:[%s1895_s7 + $0x54] ss:$8 sps:$4 sm:$0xff]  }
  0x3a   :  { %529 = vmatprep.subr.bf16.mxu1 %v1292_v60  ;;  %v1355_v60 = vld [vmem:[%s1895_s7 + $0x50] ss:$8 sps:$4 sm:$0xff]  }
  0x3b   :  { %279 = vmatpush2.bf16.msra.mxu0 %v1246_v48 }
  0x3c   :  { %280 = vmatprep.subr.bf16.mxu0 %v1247_v50  ;;  %v1340_v50 = vld [vmem:[%s1893_s5 + $0xa0] ss:$8 sps:$4 sm:$0xff]  }
  0x3d   :  { %530 = vmatpush2.bf16.msra.mxu1 %v1294_v61  ;;  %v1360_v61 = vld [vmem:[%s1895_s7 + $0x44] ss:$8 sps:$4 sm:$0xff]  }
  0x3e   :  { %531 = vmatprep.subr.bf16.mxu1 %v1295_v62  ;;  %v1358_v62 = vld [vmem:[%s1895_s7 + $0x40] ss:$8 sps:$4 sm:$0xff]  }
  0x3f   :  { %281 = vmatpush2.bf16.msra.mxu0 %v1249_v52  ;;  %v1343_v52 = vld [vmem:[%s1893_s5 + $0x90] ss:$8 sps:$4 sm:$0xff]  }
  0x40   :  { %760 = vmatprep.subr.bf16.mxu0 %v1303_v3  ;;  %v1369_v3 = vld [vmem:[%s1895_s7 + $0x14] ss:$8 sps:$4 sm:$0xff]  }
  0x41   :  { %532 = vmatpush2.bf16.msra.mxu1 %v1297_v63  ;;  %v1363_v63 = vld [vmem:[%s1895_s7 + $0x34] ss:$8 sps:$4 sm:$0xff]  }
  0x42   :  { %283 = vmatmul.mubr.bf16.vlgmr.msra.gmra.mxu0 %v1250_v54  ;;  %533 = vmatprep.subr.bf16.mxu1 %v1298_v0  ;;  %v1346_v54 = vld [vmem:[%s1893_s5 + $0x80] ss:$8 sps:$4 sm:$0xff]   ;;  %v1361_v0 = vld [vmem:[%s1895_s7 + $0x30] ss:$8 sps:$4 sm:$0xff]  }
  0x43   :  { %761 = vmatpush1.bf16.msra.mxu0 %v1301_v2  ;;  %v1364_v2 = vld [vmem:[%s1895_s7 + $0x20] ss:$8 sps:$4 sm:$0xff]  }
  0x44   :  { %762 = vmatprep.subr.bf16.mxu0 %v1306_v4  ;;  %v1367_v4 = vld [vmem:[%s1895_s7 + $0x10] ss:$8 sps:$4 sm:$0xff]  }
  0x45   :  { %534 = vmatpush2.bf16.msra.mxu1 %v1300_v1  ;;  %v1366_v1 = vld [vmem:[%s1895_s7 + $0x24] ss:$8 sps:$4 sm:$0xff]  }
  0x46   :  { %1013 = vmatprep.subr.bf16.mxu1 %v1351_v56 }
  0x47   :  { %763 = vmatpush1.bf16.msra.mxu0 %v1304_v5  ;;  %v1372_v5 = vld [vmem:[%s1895_s7 + $0x4] ss:$8 sps:$4 sm:$0xff]  }
  0x48   :  { %764 = vmatprep.subr.bf16.mxu0 %v1309_v6  ;;  %v1370_v6 = vld [vmem:[%s1895_s7] ss:$8 sps:$4 sm:$0xff]  }
  0x4b   :  { %765 = vmatpush1.bf16.msra.mxu0 %v1307_v7  ;;  %v1375_v7 = vld [vmem:[%s1895_s7 + $0xf4] ss:$8 sps:$4 sm:$0xff]  }
  0x4c   :  { %766 = vmatprep.subr.bf16.mxu0 %v1312_v8  ;;  %v1373_v8 = vld [vmem:[%s1895_s7 + $0xf0] ss:$8 sps:$4 sm:$0xff]  }
  0x4f   :  { %767 = vmatpush1.bf16.msra.mxu0 %v1310_v9  ;;  %v1378_v9 = vld [vmem:[%s1895_s7 + $0xe4] ss:$8 sps:$4 sm:$0xff]  }
  0x50   :  { %768 = vmatprep.subr.bf16.mxu0 %v1315_v10  ;;  %v1376_v10 = vld [vmem:[%s1895_s7 + $0xe0] ss:$8 sps:$4 sm:$0xff]  }
  0x53   :  { %769 = vmatpush1.bf16.msra.mxu0 %v1313_v11  ;;  %v1381_v11 = vld [vmem:[%s1895_s7 + $0xd4] ss:$8 sps:$4 sm:$0xff]  }
  0x54   :  { %770 = vmatprep.subr.bf16.mxu0 %v1318_v12  ;;  %v1379_v12 = vld [vmem:[%s1895_s7 + $0xd0] ss:$8 sps:$4 sm:$0xff]  }
  0x57   :  { %771 = vmatpush1.bf16.msra.mxu0 %v1316_v13  ;;  %v1384_v13 = vld [vmem:[%s1895_s7 + $0xc4] ss:$8 sps:$4 sm:$0xff]  }
  0x58   :  { %772 = vmatprep.subr.bf16.mxu0 %v1321_v14  ;;  %v1382_v14 = vld [vmem:[%s1895_s7 + $0xc0] ss:$8 sps:$4 sm:$0xff]  }
  0x5b   :  { %773 = vmatpush1.bf16.msra.mxu0 %v1319_v15  ;;  %v1387_v15 = vld [vmem:[%s1895_s7 + $0xb4] ss:$8 sps:$4 sm:$0xff]  }
  0x5c   :  { %774 = vmatprep.subr.bf16.mxu0 %v1324_v16  ;;  %v1385_v16 = vld [vmem:[%s1895_s7 + $0xb0] ss:$8 sps:$4 sm:$0xff]  }
  0x5f   :  { %775 = vmatpush1.bf16.msra.mxu0 %v1322_v17  ;;  %v331_v17 = vld [vmem:[%s1896_s4] sm:$0x3] }
  0x60   :  { %776 = vmatprep.subr.bf16.mxu0 %v1327_v18  ;;  %v336_v18 = vrot.slane %v331_v17, %v1730_v31 }
  0x63   :  { %777 = vmatpush2.bf16.msra.mxu0 %v1325_v19  ;;  %v340_v19 = vrot.slane %v331_v17, %v1728_v30 }
  0x64   :  { %778 = vmatprep.subr.bf16.mxu0 %v1330_v20 }
  0x67   :  { %779 = vmatpush2.bf16.msra.mxu0 %v1328_v21 }
  0x68   :  { %780 = vmatprep.subr.bf16.mxu0 %v1333_v22 }
  0x6b   :  { %781 = vmatpush2.bf16.msra.mxu0 %v1331_v23 }
  0x6c   :  { %782 = vmatprep.subr.bf16.mxu0 %v1336_v24 }
  0x6f   :  { %783 = vmatpush2.bf16.msra.mxu0 %v1334_v25 }
  0x70   :  { %784 = vmatprep.subr.bf16.mxu0 %v1339_v26 }
  0x73   :  { %785 = vmatpush2.bf16.msra.mxu0 %v1337_v27 }
  0x74   :  { %786 = vmatprep.subr.bf16.mxu0 %v1342_v49 }
  0x77   :  { %787 = vmatpush2.bf16.msra.mxu0 %v1340_v50 }
  0x78   :  { %788 = vmatprep.subr.bf16.mxu0 %v1345_v51 }
  0x7b   :  { %789 = vmatpush2.bf16.msra.mxu0 %v1343_v52 }
  0x7c   :  { %790 = vmatprep.subr.bf16.mxu0 %v1348_v53 }
  0x7f   :  { %791 = vmatpush2.bf16.msra.mxu0 %v1346_v54 }
 0x102   :  { %v284_v33 = vpop.f32.mrf.mxu0 }
 0x103   :  { %v285_v40 = vadd.f32 %v284_v33, %v73_v35 }
 0x104   :  { %v286_v36 = vpop.f32.mrf.mxu0 }
 0x105   :  { %v287_v38 = vadd.f32 %v286_v36, %v77_v34  ;;  %v293_v46 = vmax.f32 %v285_v40, 0.0  ;;  %v1390_v36 = vld [vmem:[%s1895_s7 + $0xa4] ss:$8 sps:$4 sm:$0xff]  }
 0x106   :  { %v288_v37 = vpop.f32.mrf.mxu0  ;;  %v1396_v40 = vld [vmem:[%s1895_s7 + $0x84] ss:$8 sps:$4 sm:$0xff]  }
 0x107   :  { %v289_v39 = vadd.f32 %v288_v37, %v73_v35  ;;  %v294_v44 = vmax.f32 %v287_v38, 0.0  ;;  %v1388_v37 = vld [vmem:[%s1895_s7 + $0xa0] ss:$8 sps:$4 sm:$0xff]   ;;  %v1393_v38 = vld [vmem:[%s1895_s7 + $0x94] ss:$8 sps:$4 sm:$0xff]  }
 0x108   :  { %v290_v41 = vpop.f32.mrf.mxu0 }
 0x109   :  { %v291_v42 = vadd.f32 %v290_v41, %v77_v34  ;;  %v295_v43 = vmax.f32 %v289_v39, 0.0  ;;  %v1391_v39 = vld [vmem:[%s1895_s7 + $0x90] ss:$8 sps:$4 sm:$0xff]   ;;  %v1394_v41 = vld [vmem:[%s1895_s7 + $0x80] ss:$8 sps:$4 sm:$0xff]  }
 0x10b   :  { %v296_v45 = vmax.f32 %v291_v42, 0.0  ;;  %v297_v48 = vpack.c.bf16 %v295_v43, %v293_v46  ;;  %v588_v42 = vld [vmem:[%s1898_s6] sm:$0x3] }
 0x10d   :  { %v298_v47 = vpack.c.bf16 %v296_v45, %v294_v44  ;;  %v597_v44 = vrot.slane %v588_v42, %v1728_v30  ;;  %v593_v45 = vrot.slane %v588_v42, %v1730_v31 }
 0x10f   :  { %535 = vmatprep.mubr.bf16.mxu1 %v298_v47 }
 0x110   :  { %536 = vmatmul.mubr.bf16.vlgmr.msra.gmra.mxu1 %v297_v48 }
 0x111   :  { %1014 = vmatpush1.bf16.msra.mxu1 %v1349_v55 }
 0x112   :  { %1015 = vmatprep.subr.bf16.mxu1 %v1354_v57 }
 0x115   :  { %1016 = vmatpush1.bf16.msra.mxu1 %v1352_v58 }
 0x116   :  { %1017 = vmatprep.subr.bf16.mxu1 %v1357_v59  ;;  %v841_v59 = vld [vmem:[%s1899_s8] sm:$0x3] }
 0x119   :  { %1018 = vmatpush1.bf16.msra.mxu1 %v1355_v60  ;;  %v846_v60 = vrot.slane %v841_v59, %v1730_v31 }
 0x11a   :  { %1019 = vmatprep.subr.bf16.mxu1 %v1360_v61  ;;  %v850_v61 = vrot.slane %v841_v59, %v1728_v30 }
 0x11d   :  { %1020 = vmatpush1.bf16.msra.mxu1 %v1358_v62 }
 0x11e   :  { %1021 = vmatprep.subr.bf16.mxu1 %v1363_v63 }
 0x121   :  { %1022 = vmatpush1.bf16.msra.mxu1 %v1361_v0 }
 0x122   :  { %1023 = vmatprep.subr.bf16.mxu1 %v1366_v1 }
 0x125   :  { %1024 = vmatpush1.bf16.msra.mxu1 %v1364_v2 }
 0x126   :  { %1025 = vmatprep.subr.bf16.mxu1 %v1369_v3 }
 0x129   :  { %1026 = vmatpush1.bf16.msra.mxu1 %v1367_v4 }
 0x12a   :  { %1027 = vmatprep.subr.bf16.mxu1 %v1372_v5 }
 0x12d   :  { %1028 = vmatpush1.bf16.msra.mxu1 %v1370_v6 }
 0x12e   :  { %1029 = vmatprep.subr.bf16.mxu1 %v1375_v7 }
 0x131   :  { %1030 = vmatpush2.bf16.msra.mxu1 %v1373_v8 }
 0x132   :  { %1031 = vmatprep.subr.bf16.mxu1 %v1378_v9 }
 0x135   :  { %1032 = vmatpush2.bf16.msra.mxu1 %v1376_v10 }
 0x136   :  { %1033 = vmatprep.subr.bf16.mxu1 %v1381_v11 }
 0x139   :  { %1034 = vmatpush2.bf16.msra.mxu1 %v1379_v12 }
 0x13a   :  { %1035 = vmatprep.subr.bf16.mxu1 %v1384_v13 }
 0x13d   :  { %1036 = vmatpush2.bf16.msra.mxu1 %v1382_v14 }
 0x13e   :  { %1037 = vmatprep.subr.bf16.mxu1 %v1387_v15 }
 0x141   :  { %1038 = vmatpush2.bf16.msra.mxu1 %v1385_v16 }
 0x142   :  { %1039 = vmatprep.subr.bf16.mxu1 %v1390_v36 }
 0x145   :  { %1040 = vmatpush2.bf16.msra.mxu1 %v1388_v37 }
 0x146   :  { %1041 = vmatprep.subr.bf16.mxu1 %v1393_v38 }
 0x149   :  { %1042 = vmatpush2.bf16.msra.mxu1 %v1391_v39 }
 0x14a   :  { %1043 = vmatprep.subr.bf16.mxu1 %v1396_v40 }
 0x14d   :  { %1044 = vmatpush2.bf16.msra.mxu1 %v1394_v41 }
 0x1d0   :  { %v537_v20 = vpop.f32.mrf.mxu1 }
 0x1d1   :  { %v538_v21 = vadd.f32 %v537_v20, %v336_v18 }
 0x1d2   :  { %v539_v22 = vpop.f32.mrf.mxu1 }
 0x1d3   :  { %v546_v23 = vmax.f32 %v538_v21, 0.0  ;;  %v540_v24 = vadd.f32 %v539_v22, %v340_v19 }
 0x1d4   :  { %v541_v25 = vpop.f32.mrf.mxu1 }
 0x1d5   :  { %550 = vst [vmem:[%s1897_s9] sm:$0xff] %v546_v23  ;;  %v547_v26 = vmax.f32 %v540_v24, 0.0  ;;  %v542_v27 = vadd.f32 %v541_v25, %v336_v18 }
 0x1d6   :  { %v543_v28 = vpop.f32.mrf.mxu1 }
 0x1d7   :  { %551 = vst [vmem:[%s1897_s9 + $0x8] sm:$0xff] %v547_v26  ;;  %v548_v29 = vmax.f32 %v542_v27, 0.0  ;;  %v544_v32 = vadd.f32 %v543_v28, %v340_v19 }
 0x1d9   :  { %552 = vst [vmem:[%s1897_s9 + $0x10] sm:$0xff] %v548_v29  ;;  %v549_v33 = vmax.f32 %v544_v32, 0.0  ;;  %v554_v35 = vpack.c.bf16 %v548_v29, %v546_v23 }
 0x1db   :  { %553 = vst [vmem:[%s1897_s9 + $0x18] sm:$0xff] %v549_v33  ;;  %v555_v34 = vpack.c.bf16 %v549_v33, %v547_v26 }
 0x1dd   :  { %792 = vmatprep.mubr.bf16.mxu0 %v555_v34 }
 0x1de   :  { %793 = vmatmul.mubr.bf16.vlgmr.msra.gmra.mxu0 %v554_v35 }
 0x29e   :  { %v794_v43 = vpop.f32.mrf.mxu0 }
 0x29f   :  { %v795_v50 = vadd.f32 %v794_v43, %v593_v45 }
 0x2a0   :  { %v796_v46 = vpop.f32.mrf.mxu0 }
 0x2a1   :  { %v797_v48 = vadd.f32 %v796_v46, %v597_v44  ;;  %v803_v56 = vmax.f32 %v795_v50, 0.0 }
 0x2a2   :  { %v798_v47 = vpop.f32.mrf.mxu0 }
 0x2a3   :  { %v799_v49 = vadd.f32 %v798_v47, %v593_v45  ;;  %v804_v54 = vmax.f32 %v797_v48, 0.0 }
 0x2a4   :  { %v800_v51 = vpop.f32.mrf.mxu0 }
 0x2a5   :  { %v801_v52 = vadd.f32 %v800_v51, %v597_v44  ;;  %v805_v53 = vmax.f32 %v799_v49, 0.0 }
 0x2a7   :  { %v806_v55 = vmax.f32 %v801_v52, 0.0  ;;  %v807_v58 = vpack.c.bf16 %v805_v53, %v803_v56 }
 0x2a9   :  { %v808_v57 = vpack.c.bf16 %v806_v55, %v804_v54 }
 0x2ab   :  { %1045 = vmatprep.mubr.bf16.mxu1 %v808_v57 }
 0x2ac   :  { %1046 = vmatmul.mubr.bf16.vlgmr.msra.gmra.mxu1 %v807_v58 }
 0x36c   :  { %v1047_v62 = vpop.f32.mrf.mxu1 }
 0x36d   :  { %v1048_v63 = vadd.f32 %v1047_v62, %v846_v60 }
 0x36e   :  { %v1049_v0 = vpop.f32.mrf.mxu1 }
 0x36f   :  { %v1056_v1 = vmax.f32 %v1048_v63, 0.0  ;;  %v1050_v2 = vadd.f32 %v1049_v0, %v850_v61 }
 0x370   :  { %v1051_v3 = vpop.f32.mrf.mxu1 }
 0x371   :  { %1060 = vst [vmem:[%s1900_s10] sm:$0xff] %v1056_v1  ;;  %v1057_v4 = vmax.f32 %v1050_v2, 0.0  ;;  %v1052_v5 = vadd.f32 %v1051_v3, %v846_v60 }
 0x372   :  { %v1053_v6 = vpop.f32.mrf.mxu1 }
 0x373   :  { %1061 = vst [vmem:[%s1900_s10 + $0x8] sm:$0xff] %v1057_v4  ;;  %v1058_v31 = vmax.f32 %v1052_v5, 0.0  ;;  %v1054_v7 = vadd.f32 %v1053_v6, %v850_v61 }
 0x375   :  { %1062 = vst [vmem:[%s1900_s10 + $0x10] sm:$0xff] %v1058_v31  ;;  %v1059_v30 = vmax.f32 %v1054_v7, 0.0 }
 0x377   :  { %1063 = vst [vmem:[%s1900_s10 + $0x18] sm:$0xff] %v1059_v30 }

</bundles_post_ra>
